<compile_context>
chip_gen: v5e
topology: v5e:2x2
jax: 0.10.0
libtpu: 0.0.40
codegen_flags: <defaults>
</compile_context>

<pallas_src>
import functools
from typing import List, Tuple

import jax
import jax.numpy as jnp
import numpy as np
from jax.experimental import pallas as pl
from jax.experimental.pallas import tpu as pltpu


# ----------------------------------------------------------------------------
# Pallas kernel: one FMA per output element
# ----------------------------------------------------------------------------
def _anchor_rows_kernel(const_ref, out_ref, *, stride_h: float, tile_h: int):
    """out[r, l] = const[0, l] + ((tile*tile_h + r) * stride_h) * const[1, l]

    const row 0: base[a, c] (+ x*stride_w on x-coordinate lanes, c even)
    const row 1: 1.0 on y-coordinate lanes (c odd), else 0.0
    """
    i = pl.program_id(0)
    row_local = jax.lax.broadcasted_iota(jnp.int32, (tile_h, 1), 0)
    y_shift = (row_local + i * tile_h).astype(jnp.float32) * jnp.float32(stride_h)
    const = const_ref[...]                                     # (2, L)
    vals = const[0:1, :] + y_shift * const[1:2, :]             # (tile_h, L)
    out_ref[...] = vals.astype(out_ref.dtype)


# ----------------------------------------------------------------------------
# Tiling helpers
# ----------------------------------------------------------------------------
def _cdiv(a: int, b: int) -> int:
    return (a + b - 1) // b


def _round_up(x: int, m: int) -> int:
    return _cdiv(x, m) * m


def _pick_tile_h(H: int, lane_width: int, elem_bytes: int,
                 target_tile_bytes: int = 4 << 20) -> int:
    """Rows per output tile.

    - multiple of 8 (or full H when H <= 8),
    - ~<= 4 MiB per tile (double-buffered output <= 8 MiB -> fits v5e default),
    - capped at round_up(ceil(H/2), 8) so grid_h >= 2 (both v7x TCs get work),
    - prefer a divisor of H (no masked ragged tail) when it is not much smaller.
    """
    if H <= 8:
        return H
    budget_rows = max(8, target_tile_bytes // max(1, lane_width * elem_bytes))
    half_cap = _round_up(_cdiv(H, 2), 8)
    cap = min(H, budget_rows, half_cap)
    cap = max(8, (cap // 8) * 8)

    best_div = 0
    for d in range(8, cap + 1, 8):
        if H % d == 0:
            best_div = d
    if best_div and (2 * best_div >= cap
                     or best_div * lane_width * elem_bytes >= (1 << 20)):
        return best_div
    return cap


# Levels below these thresholds skip pallas_call (dispatch overhead + masked
# stores dominate); they run once anyway thanks to the cache.
_MIN_LANES = 128
_SMALL_LEVEL_BYTES = 256 << 10


def _grid_anchors_one_level(base_anchors_f32: np.ndarray,
                            grid_size: Tuple[int, int],
                            stride: Tuple[float, float],
                            out_dtype) -> jnp.ndarray:
    """Anchors of shape (H*W*A, 4) matching the PyTorch (y, x, a, c) order."""
    H, W = int(grid_size[0]), int(grid_size[1])
    sh, sw = float(stride[0]), float(stride[1])
    A = int(base_anchors_f32.shape[0])
    L = W * 4 * A

    # Host-side per-lane constants (only 2*L floats — negligible).
    xs = np.arange(W, dtype=np.float32) * np.float32(sw)                  # (W,)
    base = base_anchors_f32.astype(np.float32)                            # (A, 4)
    x_mask = (np.arange(4) % 2 == 0).astype(np.float32)                   # c in {0, 2}
    row_const = base[None, :, :] + xs[:, None, None] * x_mask[None, None, :]
    y_mask = np.broadcast_to(1.0 - x_mask, (W, A, 4))
    const = np.stack([row_const.reshape(L), y_mask.reshape(L)],
                     axis=0).astype(np.float32)                           # (2, L)

    elem_bytes = int(np.dtype(out_dtype).itemsize)

    # Fast path for tiny / lane-sparse levels: plain jnp broadcasting.
    if L < _MIN_LANES or H * L * elem_bytes < _SMALL_LEVEL_BYTES:
        ys = jnp.arange(H, dtype=jnp.float32) * jnp.float32(sh)           # (H,)
        out = (jnp.asarray(const[0]).reshape(1, L)
               + ys[:, None] * jnp.asarray(const[1]).reshape(1, L))
        return out.astype(out_dtype).reshape(-1, 4)

    tile_h = _pick_tile_h(H, L, elem_bytes)
    grid_h = _cdiv(H, tile_h)

    kernel = functools.partial(_anchor_rows_kernel, stride_h=sh, tile_h=tile_h)
    out = pl.pallas_call(
        kernel,
        out_shape=jax.ShapeDtypeStruct((H, L), out_dtype),
        grid=(grid_h,),
        in_specs=[pl.BlockSpec((2, L), lambda i: (0, 0))],     # resident consts
        out_specs=pl.BlockSpec((tile_h, L), lambda i: (i, 0)),
        compiler_params=pltpu.CompilerParams(
            dimension_semantics=("parallel",)),
    )(jnp.asarray(const))

    # (H, W*4A) row-major already equals (y, x, a, c) ordering -> free reshape.
    return out.reshape(-1, 4)


def _quantize_scalar(v, dtype) -> float:
    """Mirror torch.tensor(v, dtype=dtype) followed by f32 promotion."""
    return float(jnp.asarray(float(v), dtype=dtype).astype(jnp.float32))


# ----------------------------------------------------------------------------
# Module-equivalent wrapper (anchor-template setup is host-side glue)
# ----------------------------------------------------------------------------
class ImageList:
    def __init__(self, tensors, image_sizes):
        self.tensors = tensors            # (N, C, H, W)
        self.image_sizes = image_sizes    # list of (h, w) per image


class AnchorGeneratorPallas:
    def __init__(self,
                 sizes=((128, 256, 512),),
                 aspect_ratios=((0.5, 1.0, 2.0),)):
        if not isinstance(sizes[0], (list, tuple)):
            sizes = tuple((s,) for s in sizes)
        if not isinstance(aspect_ratios[0], (list, tuple)):
            aspect_ratios = (aspect_ratios,) * len(sizes)
        assert len(sizes) == len(aspect_ratios)
        self.sizes = sizes
        self.aspect_ratios = aspect_ratios
        self.cell_anchors = None
        self._cell_anchors_dtype = None
        self._anchor_cache = {}   # (grid_sizes, image_size, dtype) -> concat anchors

    @staticmethod
    def generate_anchors(scales, aspect_ratios, dtype=jnp.float32):
        """Anchor templates, computed in `dtype` like the PyTorch code.

        jnp.round uses round-half-to-even, same as torch.round.
        """
        scales = jnp.asarray(scales, dtype=dtype)
        aspect_ratios = jnp.asarray(aspect_ratios, dtype=dtype)
        h_ratios = jnp.sqrt(aspect_ratios)
        w_ratios = 1.0 / h_ratios
        ws = (w_ratios[:, None] * scales[None, :]).reshape(-1)
        hs = (h_ratios[:, None] * scales[None, :]).reshape(-1)
        base_anchors = jnp.stack([-ws, -hs, ws, hs], axis=1) / 2.0
        return jnp.round(base_anchors)

    def set_cell_anchors(self, dtype):
        if self.cell_anchors is not None and self._cell_anchors_dtype == np.dtype(dtype):
            return
        self.cell_anchors = [
            self.generate_anchors(s, a, dtype)
            for s, a in zip(self.sizes, self.aspect_ratios)
        ]
        self._cell_anchors_dtype = np.dtype(dtype)

    def num_anchors_per_location(self):
        return [len(s) * len(a) for s, a in zip(self.sizes, self.aspect_ratios)]

    def grid_anchors(self, grid_sizes, strides, dtype) -> List[jnp.ndarray]:
        # Spec semantics: f32 shifts + dtype cell_anchors -> promoted output.
        out_dtype = jnp.promote_types(jnp.float32, dtype)
        anchors = []
        # TODO(synk): all FPN levels could be fused into a single pallas_call
        # with per-level SMEM metadata and a common padded lane width; kept as
        # one call per (cached) level since the whole thing runs once anyway.
        for size, stride, base_anchors in zip(grid_sizes, strides, self.cell_anchors):
            base_f32 = np.asarray(base_anchors.astype(jnp.float32))
            anchors.append(_grid_anchors_one_level(base_f32, size, stride, out_dtype))
        return anchors

    def __call__(self, image_list: ImageList, feature_maps: List[jnp.ndarray]):
        grid_sizes = tuple(tuple(int(s) for s in fm.shape[-2:]) for fm in feature_maps)
        image_size = tuple(int(s) for s in image_list.tensors.shape[-2:])
        dtype = feature_maps[0].dtype
        key = (grid_sizes, image_size, np.dtype(dtype).name)

        cat = self._anchor_cache.get(key)
        if cat is None:
            self.set_cell_anchors(dtype)
            strides = [(_quantize_scalar(image_size[0] // g[0], dtype),
                        _quantize_scalar(image_size[1] // g[1], dtype))
                       for g in grid_sizes]
            per_level = self.grid_anchors(grid_sizes, strides, dtype)
            # Anchors are static: concat runs once per config and is cached.
            cat = jnp.concatenate(per_level, axis=0)
            self._anchor_cache[key] = cat

        return [cat for _ in image_list.image_sizes]


# ----------------------------------------------------------------------------
# Pure-numpy reference (mirrors the PyTorch code, f32) for validation
# ----------------------------------------------------------------------------
def _reference_anchors(sizes, aspect_ratios, image_size, grid_sizes, n_images):
    per_level = []
    for (H, W), scales, ars in zip(grid_sizes, sizes, aspect_ratios):
        scales = np.asarray(scales, np.float32)
        ars = np.asarray(ars, np.float32)
        h_ratios = np.sqrt(ars)
        w_ratios = 1.0 / h_ratios
        ws = (w_ratios[:, None] * scales[None, :]).reshape(-1)
        hs = (h_ratios[:, None] * scales[None, :]).reshape(-1)
        base = np.round(np.stack([-ws, -hs, ws, hs], axis=1) / 2.0).astype(np.float32)
        sh = np.float32(image_size[0] // H)
        sw = np.float32(image_size[1] // W)
        shifts_x = np.arange(0, W, dtype=np.float32) * sw
        shifts_y = np.arange(0, H, dtype=np.float32) * sh
        shift_y, shift_x = np.meshgrid(shifts_y, shifts_x, indexing="ij")
        shifts = np.stack([shift_x.reshape(-1), shift_y.reshape(-1),
                           shift_x.reshape(-1), shift_y.reshape(-1)], axis=1)
        per_level.append((shifts[:, None, :] + base[None, :, :]).reshape(-1, 4))
    cat = np.concatenate(per_level, axis=0).astype(np.float32)
    return [cat for _ in range(n_images)]


if __name__ == "__main__":
    key = jax.random.PRNGKey(0)
    k1, k2, k3, k4, k5 = jax.random.split(key, 5)

    # ----- Config A: 3 FPN levels, f32.  The 128x128 level (>256 KiB output,
    # lane-dense) goes through the Pallas kernel with grid_h=2; the smaller
    # levels take the jnp fast path. -----
    batch, channels = 2, 4
    image_hw = (256, 256)
    image_tensors = jax.random.normal(k1, (batch, 3) + image_hw, dtype=jnp.float32)
    feature_maps = [
        jax.random.normal(k2, (batch, channels, 128, 128), dtype=jnp.float32),
        jax.random.normal(k3, (batch, channels, 64, 64), dtype=jnp.float32),
        jax.random.normal(k4, (batch, channels, 32, 32), dtype=jnp.float32),
    ]
    image_list = ImageList(image_tensors, [image_hw] * batch)

    sizes = ((32, 64, 128), (64, 128, 256), (128, 256, 512))
    aspect_ratios = ((0.5, 1.0, 2.0),) * 3

    gen = AnchorGeneratorPallas(sizes=sizes, aspect_ratios=aspect_ratios)
    anchors = gen(image_list, feature_maps)
    anchors = [jax.block_until_ready(a) for a in anchors]

    ref = _reference_anchors(sizes, aspect_ratios, image_hw,
                             [fm.shape[-2:] for fm in feature_maps], batch)
    assert len(anchors) == len(ref)
    for a, r in zip(anchors, ref):
        assert a.shape == r.shape, (a.shape, r.shape)
        assert a.dtype == jnp.float32
        np.testing.assert_allclose(np.asarray(a), r, rtol=0, atol=0)

    # Second forward hits the cache: same (already computed) device array.
    anchors2 = gen(image_list, feature_maps)
    assert anchors2[0] is anchors[0]

    # ----- Config B: H=100 exercises the ragged last Pallas tile (tile_h=56),
    # run in f32 and bf16 (spec promotion keeps the output f32). -----
    sizes_b = ((16, 32, 64),)
    ars_b = ((0.5, 1.0, 2.0),)
    img_hw_b = (200, 200)
    img_b = jnp.zeros((1, 3) + img_hw_b, dtype=jnp.float32)
    ref_b = _reference_anchors(sizes_b, ars_b, img_hw_b, [(100, 100)], 1)[0]
    for feat_dtype in (jnp.float32, jnp.bfloat16):
        fm_b = jax.random.normal(k5, (1, channels, 100, 100)).astype(feat_dtype)
        il_b = ImageList(img_b, [img_hw_b])
        gen_b = AnchorGeneratorPallas(sizes=sizes_b, aspect_ratios=ars_b)
        out_b = jax.block_until_ready(gen_b(il_b, [fm_b])[0])
        assert out_b.dtype == jnp.float32
        assert out_b.shape == ref_b.shape
        np.testing.assert_allclose(np.asarray(out_b), ref_b, rtol=0, atol=0)

    print("KERNEL_OK")
</pallas_src>

<mosaic_0001>
module attributes {stable_mosaic.version = 11 : i64} {
  func.func @_anchor_rows_kernel(%arg0: i32, %arg1: memref<2x4608xf32, #tpu.memory_space<vmem>>, %arg2: memref<64x4608xf32, #tpu.memory_space<vmem>>) attributes {dimension_semantics = [#tpu.dimension_semantics<parallel>], iteration_bounds = array<i64: 2>, scalar_prefetch = 0 : i64, scratch_operands = 0 : i64, tpu.core_type = #tpu.core_type<tc>, window_params = [{pipeline_mode = #tpu.pipeline_mode<synchronous>, transform_indices = @transform_0, window_bounds = array<i64: 2, 4608>}, {transform_indices = @transform_1, window_bounds = array<i64: 64, 4608>}]} {
    %0 = tpu.iota {dimensions = array<i32: 0>} : vector<64x1xi32>
    %c64_i32 = arith.constant 64 : i32
    %1 = arith.muli %arg0, %c64_i32 : i32
    %2 = vector.broadcast %1 : i32 to vector<64x1xi32>
    %3 = arith.addi %0, %2 : vector<64x1xi32>
    %4 = arith.sitofp %3 : vector<64x1xi32> to vector<64x1xf32>
    %cst = arith.constant 2.000000e+00 : f32
    %5 = vector.broadcast %cst : f32 to vector<64x1xf32>
    %6 = arith.mulf %4, %5 : vector<64x1xf32>
    %c0 = arith.constant 0 : index
    %c0_0 = arith.constant 0 : index
    %7 = vector.load %arg1[%c0, %c0_0] : memref<2x4608xf32, #tpu.memory_space<vmem>>, vector<2x4608xf32>
    %8 = vector.extract_strided_slice %7 {offsets = [0, 0], sizes = [1, 4608], strides = [1, 1]} : vector<2x4608xf32> to vector<1x4608xf32>
    %9 = vector.extract_strided_slice %7 {offsets = [1, 0], sizes = [1, 4608], strides = [1, 1]} : vector<2x4608xf32> to vector<1x4608xf32>
    %10 = vector.broadcast %6 : vector<64x1xf32> to vector<64x4608xf32>
    %11 = vector.broadcast %9 : vector<1x4608xf32> to vector<64x4608xf32>
    %12 = arith.mulf %10, %11 : vector<64x4608xf32>
    %13 = vector.broadcast %8 : vector<1x4608xf32> to vector<64x4608xf32>
    %14 = arith.addf %13, %12 : vector<64x4608xf32>
    %c0_1 = arith.constant 0 : index
    %c0_2 = arith.constant 0 : index
    %15 = vector.load %arg2[%c0_1, %c0_2] : memref<64x4608xf32, #tpu.memory_space<vmem>>, vector<64x4608xf32>
    tpu.vector_store %arg2[%c0_1, %c0_2], %14 {strides = array<i32>} : memref<64x4608xf32, #tpu.memory_space<vmem>>, vector<64x4608xf32>,
    return
  }
  func.func @transform_0(%arg0: i32) -> (i32, i32) {
    %c0_i32 = arith.constant 0 : i32
    %c0_i32_0 = arith.constant 0 : i32
    %c0_i32_1 = arith.constant 0 : i32
    return %c0_i32, %c0_i32_0 : i32, i32
  }
  func.func @transform_1(%arg0: i32) -> (i32, i32) {
    %c0_i32 = arith.constant 0 : i32
    %c0_i32_0 = arith.constant 0 : i32
    return %arg0, %c0_i32 : i32, i32
  }
}

</mosaic_0001>

<bundles_post_ra>
// kernel: tpu_custom_call.1
= control target key start
LH: loop header
LB: loop body
LE: loop exit
PB: predicated region body
PF: predicated region fallthrough
CT: control target
= control target key end

     0   :  { %6 = vsyncpa [#allocation3], 0  ;;  %s2926_s0 = inlined_call_operand.hbm [shape: f32[2,4608], index: 0, kind: input, shape index: {}]   ;;  %s2927_s1 = inlined_call_operand.hbm [shape: f32[128,4608], index: 1, kind: output, shape index: {}]  }
   0x1   :  { %7 = vsyncpa [#allocation4], 0 }
   0x2   :  { %9 = vsyncpa [#allocation4 + $0x1], 0  ;;  %s1499_s6 = smov 0   ;;  %s1501_s7 = smov 0  }
   0x3   :  { %s1503_s8 = smov 0   ;;  %s1505_s9 = smov 0  }
   0x4 LB: > { %s1520_s10 = sadd.s32 4294967295, %s1484_s9   ;;  %s1323_s11 = sadd.s32 4294967294, %s1484_s9   ;;  %s1484_s9 = sphi %s1505_s9, %s3299_s9   ;;  %s1480_s8 = sphi %s1503_s8, %s3298_s8   ;;  %s1476_s7 = sphi %s1501_s7, %s3297_s7   ;;  %s1472_s6 = sphi %s1499_s6, %s3296_s6  }
   0x5   : > { %s1524_s12 = sadd.s32 1, %s1484_s9   ;;  %s43_s13 = sadd.s32 1, %s1480_s8 }
   0x6   : > { %s40_s14 = ssub.s32 %s1484_s9, %s1524_s12  ;;  %p53_p0 = scmp.ne.s32.totalorder %s1480_s8, %s1476_s7 }
   0x7   : > { %p41_p1 = scmp.eq.s32.totalorder %s40_s14, 0  ;;  %p54_p2 = scmp.eq.s32.totalorder %s1520_s10, 1 }
   0x8   : > { %p59_p3 = scmp.ne.s32.totalorder %s1476_s7, %s1472_s6  ;;  %p60_p4 = scmp.eq.s32.totalorder %s1323_s11, 1 }
   0x9   : > { %s1535_s15 = scalar_select %p41_p1, %s1480_s8, %s43_s13  }
   0xa   : > { %p1537_p5 = por %p54_p2, %p53_p0  ;;  %p1541_p6 = por %p60_p4, %p59_p3 }
   0xb   : > { %p1324_p7 = scmp.ge.s32.totalorder %s1484_s9, 1  ;;  %p67_p8 = scmp.lt.s32.totalorder %s1484_s9, 3 }
   0xc   : > { %p1350_p9 = scmp.eq.s32.totalorder %s1520_s10, 0  ;;  %s79_s20 = sshll.u32 %s2926_s0, 4  ;;  %s80_s20 = int_to_ptr.hbm [resolvable:$true] %s79_s20 }
   0xd   : > { %p68_p10 = pnand %p1324_p7, %p67_p8  ;;  %s1486_s21 = smov [#allocation2]  }
   0xe   : > { %s81_s22 = sshll.u32 %s1486_s21, 4  ;;  %s82_s22 = int_to_ptr.vmem [resolvable:$true] %s81_s22 }
   0xf   : > { %p1342_p11 = pneg %p68_p10  ;;  %94 = sbr.rel (%p68_p10) target bundleno = 382 (0x17e), region = 24 }
  0x11   : > { %p1343_p12 = pnand %p1350_p9, %p1342_p11 }
  0x13   : > { %1345 = dma.hbm_to_vmem [thread:$0]  (!%p1343_p12), %s80_s20, 1152, %s82_s22, [#allocation3]  }
  0x14   : > { %1463 = dma.done.wait (%p1350_p9), [#allocation3], 1152  }
  0x15   : > { %1465 = vsyncadd (%p1350_p9), [#allocation3], 4294966144  ;;  %v111_v0 = vlaneseq  ;;  %s1328_s23 = sshll.u32 %s1520_s10, 6  ;;  %s107_s24 = sand.u32 1, %s1476_s7   ;;  %v146_v5 = vld [vmem:[#allocation2] sm:$0xff]  ;;  %v147_v14 = vld [vmem:[#allocation2 + $0x8] sm:$0xff] }
  0x16   : > { %v1552_v1 = vstv %s1328_s23  ;;  %v164_v7 = vperm.slane %v146_v5, 1  ;;  %v560_v8 = vperm.slane %v146_v5, 0  ;;  %v165_v9 = vperm.slane %v146_v5, 3  ;;  %s1563_s25 = smul.u32 2304, %s107_s24  ;;  %v148_v35 = vld [vmem:[#allocation2 + $0x10] sm:$0xff]  ;;  %s1245_s4 = scalar_lea.sflag [#allocation4], %s107_s24 }
  0x17   : > { %3056 = vst [vmem:[#allocation8_spill] sm:$0xff] %v1552_v1  ;;  %v1554_v2 = vshrl.u32 %v111_v0, 7  ;;  %v561_v10 = vperm.slane %v146_v5, 2  ;;  %v166_v11 = vperm.slane %v146_v5, 5  ;;  %v562_v12 = vperm.slane %v146_v5, 4  ;;  %v149_v0 = vld [vmem:[#allocation2 + $0x18] sm:$0xff] }
  0x18   : > { %v167_v13 = vperm.slane %v146_v5, 7  ;;  %v1565_v15 = vperm.slane %v164_v7, 1  ;;  %v1567_v16 = vperm.slane %v560_v8, 0  ;;  %v1569_v17 = vperm.slane %v165_v9, 1  ;;  %s1600_s26 = scalar_lea.vmem [#allocation5], %s1563_s25  ;;  %s1335_s27 = smul.u32 2304, %s1520_s10 }
  0x19   : > { %3057 = vst [vmem:[#allocation9_spill] sm:$0xff] %v1554_v2  ;;  %v122_v3 = vadd.s32 %v1552_v1, %v1554_v2  ;;  %v563_v18 = vperm.slane %v146_v5, 6  ;;  %v1571_v19 = vperm.slane %v561_v10, 0  ;;  %v1573_v20 = vperm.slane %v166_v11, 1  ;;  %s1258_s2 = sshll.u32 %s1600_s26, 4  ;;  %s1438_s14 = scalar_lea.hbm %s2927_s1, 4608  ;;  %s1259_s2 = int_to_ptr.vmem [resolvable:$true] %s1258_s2 }
  0x1a   : > { %v1575_v21 = vperm.slane %v562_v12, 0  ;;  %v1577_v22 = vperm.slane %v167_v13, 1  ;;  %v168_v26 = vperm.slane %v147_v14, 1  ;;  %v564_v29 = vperm.slane %v147_v14, 0  ;;  %s1257_s30 = scalar_lea.hbm %s2927_s1, %s1335_s27 }
  0x1b   : > { %v130_v4 = vcvt.s32.f32 %v122_v3  ;;  %3058 = vst [vmem:[#allocation10_spill] sm:$0xff] %v1571_v19  ;;  %v1583_v25 = vperm.slane %v563_v18, 0  ;;  %v169_v30 = vperm.slane %v147_v14, 3  ;;  %v565_v34 = vperm.slane %v147_v14, 2  ;;  %s1260_s3 = sshll.u32 %s1257_s30, 4  ;;  %s1261_s3 = int_to_ptr.hbm [resolvable:$true] %s1260_s3 }
  0x1c   : > { %3059 = vst [vmem:[#allocation11_spill] sm:$0xff] %v1575_v21  ;;  %v1591_v33 = vperm.slane %v168_v26, 1  ;;  %v1595_v38 = vperm.slane %v564_v29, 0  ;;  %v170_v42 = vperm.slane %v147_v14, 5  ;;  %v566_v43 = vperm.slane %v147_v14, 4  ;;  %s1432_s5 = sshra.s32 %s1261_s3, 4  ;;  %s1433_s5 = int_to_ptr.hbm [resolvable:$true] %s1432_s5 }
  0x1d   : > { %v1559_v6 = vmul.f32 2.0, %v130_v4  ;;  %3060 = vst [vmem:[#allocation12_spill] sm:$0xff] %v1583_v25  ;;  %v1597_v39 = vperm.slane %v169_v30, 1  ;;  %v1605_v41 = vperm.slane %v565_v34, 0  ;;  %v171_v45 = vperm.slane %v147_v14, 7  ;;  %s1434_s10 = scalar_lea.hbm %s1433_s5, 2304  ;;  %p1439_p2 = scmp.lt.s32.totalorder %s1433_s5, %s2927_s1 }
  0x1e   : > { %3061 = vst [vmem:[#allocation13_spill] sm:$0xff] %v1591_v33  ;;  %v567_v46 = vperm.slane %v147_v14, 6  ;;  %v172_v47 = vperm.slane %v148_v35, 1  ;;  %v1612_v49 = vperm.slane %v170_v42, 1  ;;  %v1614_v50 = vperm.slane %v566_v43, 0  ;;  %p1435_p13 = scmp.ne.s32.totalorder %s1433_s5, %s1434_s10  ;;  %p1440_p3 = scmp.lt.s32.totalorder %s1438_s14, %s1434_s10 }
  0x1f   : > { %v272_v23 = vmul.f32 %v1565_v15, %v1559_v6  ;;  %v273_v24 = vmul.f32 %v1569_v17, %v1559_v6  ;;  %v274_v27 = vmul.f32 %v1573_v20, %v1559_v6  ;;  %v275_v28 = vmul.f32 %v1577_v22, %v1559_v6  ;;  %3062 = vst [vmem:[#allocation14_spill] sm:$0xff] %v1595_v38 }
  0x20   : > { %3063 = vst [vmem:[#allocation15_spill] sm:$0xff] %v1597_v39  ;;  %v276_v40 = vmul.f32 %v1591_v33, %v1559_v6  ;;  %v277_v44 = vmul.f32 %v1597_v39, %v1559_v6  ;;  %v568_v51 = vperm.slane %v148_v35, 0  ;;  %v1618_v53 = vperm.slane %v171_v45, 1  ;;  %p1436_p0 = pnand %p1435_p13, %p1537_p5  ;;  %p1441_p4 = por %p1440_p3, %p1439_p2 }
  0x21   : > { %v668_v31 = vadd.f32 %v1567_v16, %v272_v23  ;;  %v669_v32 = vadd.f32 %v1571_v19, %v273_v24  ;;  %v670_v36 = vadd.f32 %v1575_v21, %v274_v27  ;;  %v671_v37 = vadd.f32 %v1583_v25, %v275_v28  ;;  %3064 = vst [vmem:[#allocation16_spill] sm:$0xff] %v1605_v41 }
  0x22   : > { %v672_v48 = vadd.f32 %v1595_v38, %v276_v40  ;;  %3065 = vst [vmem:[#allocation17_spill] sm:$0xff] %v1612_v49  ;;  %v673_v52 = vadd.f32 %v1605_v41, %v277_v44  ;;  %v1620_v54 = vperm.slane %v567_v46, 0  ;;  %v1622_v55 = vperm.slane %v172_v47, 1  ;;  %p1437_p1 = pneg %p1436_p0 }
  0x23   : > { %956 = vst [vmem:[%s1600_s26] sm:$0xff] %v668_v31  ;;  %v278_v56 = vmul.f32 %v1612_v49, %v1559_v6  ;;  %v1627_v57 = vperm.slane %v568_v51, 0  ;;  %v173_v58 = vperm.slane %v148_v35, 3  ;;  %v569_v59 = vperm.slane %v148_v35, 2 }
  0x24   : > { %957 = vst [vmem:[%s1600_s26 + $0x8] sm:$0xff] %v669_v32  ;;  %v279_v60 = vmul.f32 %v1618_v53, %v1559_v6  ;;  %v280_v61 = vmul.f32 %v1622_v55, %v1559_v6  ;;  %v174_v62 = vperm.slane %v148_v35, 5  ;;  %v570_v63 = vperm.slane %v148_v35, 4  ;;  %v150_v32 = vld [vmem:[#allocation2 + $0x20] sm:$0xff]  ;;  %p1442_p7 = pnand %p1441_p4, %p1437_p1 }
  0x25   : > { %958 = vst [vmem:[%s1600_s26 + $0x10] sm:$0xff] %v670_v36  ;;  %v674_v3 = vadd.f32 %v1614_v50, %v278_v56  ;;  %v1635_v4 = vperm.slane %v173_v58, 1  ;;  %v1637_v5 = vperm.slane %v569_v59, 0  ;;  %v175_v7 = vperm.slane %v148_v35, 7 }
  0x26   : > { %3066 = vst [vmem:[#allocation18_spill] sm:$0xff] %v1614_v50  ;;  %v675_v8 = vadd.f32 %v1620_v54, %v279_v60  ;;  %v676_v9 = vadd.f32 %v1627_v57, %v280_v61  ;;  %v1641_v10 = vperm.slane %v174_v62, 1  ;;  %v1643_v11 = vperm.slane %v570_v63, 0 }
  0x27   : > { %959 = vst [vmem:[%s1600_s26 + $0x18] sm:$0xff] %v671_v37  ;;  %v281_v12 = vmul.f32 %v1635_v4, %v1559_v6  ;;  %v1648_v13 = vperm.slane %v175_v7, 1  ;;  %v571_v14 = vperm.slane %v148_v35, 6  ;;  %v176_v18 = vperm.slane %v149_v0, 1 }
  0x28   : > { %3067 = vst [vmem:[#allocation19_spill] sm:$0xff] %v1618_v53  ;;  %v282_v23 = vmul.f32 %v1641_v10, %v1559_v6  ;;  %v572_v24 = vperm.slane %v149_v0, 0  ;;  %v177_v26 = vperm.slane %v149_v0, 3  ;;  %v573_v27 = vperm.slane %v149_v0, 2 }
  0x29   : > { %3068 = vst [vmem:[#allocation20_spill] sm:$0xff] %v1620_v54  ;;  %v677_v28 = vadd.f32 %v1637_v5, %v281_v12  ;;  %v283_v29 = vmul.f32 %v1648_v13, %v1559_v6  ;;  %v1657_v30 = vperm.slane %v571_v14, 0  ;;  %v1659_v31 = vperm.slane %v176_v18, 1  ;;  %v151_v18 = vld [vmem:[#allocation2 + $0x28] sm:$0xff] }
  0x2a   : > { %3069 = vst [vmem:[#allocation21_spill] sm:$0xff] %v1622_v55  ;;  %v678_v34 = vadd.f32 %v1643_v11, %v282_v23  ;;  %v1662_v35 = vperm.slane %v572_v24, 0  ;;  %v1664_v36 = vperm.slane %v177_v26, 1  ;;  %v1666_v37 = vperm.slane %v573_v27, 0 }
  0x2b   : > { %960 = vst [vmem:[%s1600_s26 + $0x20] sm:$0xff] %v672_v48  ;;  %v679_v40 = vadd.f32 %v1657_v30, %v283_v29  ;;  %v284_v42 = vmul.f32 %v1659_v31, %v1559_v6  ;;  %v178_v43 = vperm.slane %v149_v0, 5  ;;  %v574_v44 = vperm.slane %v149_v0, 4 }
  0x2c   : > { %3070 = vst [vmem:[#allocation22_spill] sm:$0xff] %v1627_v57  ;;  %v285_v45 = vmul.f32 %v1664_v36, %v1559_v6  ;;  %v179_v46 = vperm.slane %v149_v0, 7  ;;  %v575_v47 = vperm.slane %v149_v0, 6  ;;  %v180_v48 = vperm.slane %v150_v32, 1 }
  0x2d   : > { %961 = vst [vmem:[%s1600_s26 + $0x28] sm:$0xff] %v673_v52  ;;  %v680_v51 = vadd.f32 %v1662_v35, %v284_v42  ;;  %v1677_v52 = vperm.slane %v178_v43, 1  ;;  %v1679_v56 = vperm.slane %v574_v44, 0  ;;  %v576_v58 = vperm.slane %v150_v32, 0 }
  0x2e   : > { %3071 = vst [vmem:[#allocation23_spill] sm:$0xff] %v1635_v4  ;;  %v681_v59 = vadd.f32 %v1666_v37, %v285_v45  ;;  %v1682_v60 = vperm.slane %v179_v46, 1  ;;  %v1684_v61 = vperm.slane %v575_v47, 0  ;;  %v1686_v62 = vperm.slane %v180_v48, 1 }
  0x2f   : > { %3072 = vst [vmem:[#allocation24_spill] sm:$0xff] %v1637_v5  ;;  %v286_v63 = vmul.f32 %v1677_v52, %v1559_v6  ;;  %v1691_v0 = vperm.slane %v576_v58, 0  ;;  %v577_v7 = vperm.slane %v150_v32, 2  ;;  %v182_v12 = vperm.slane %v150_v32, 5 }
  0x30   : > { %3073 = vst [vmem:[#allocation25_spill] sm:$0xff] %v1641_v10  ;;  %v578_v14 = vperm.slane %v150_v32, 4  ;;  %v183_v27 = vperm.slane %v150_v32, 7  ;;  %v579_v44 = vperm.slane %v150_v32, 6  ;;  %v184_v45 = vperm.slane %v151_v18, 1 }
  0x31   : > { %3074 = vst [vmem:[#allocation26_spill] sm:$0xff] %v1643_v11  ;;  %v682_v23 = vadd.f32 %v1679_v56, %v286_v63  ;;  %v1701_v26 = vperm.slane %v577_v7, 0  ;;  %v580_v47 = vperm.slane %v151_v18, 0  ;;  %v185_v48 = vperm.slane %v151_v18, 3 }
  0x32   : > { %962 = vst [vmem:[%s1600_s26 + $0x30] sm:$0xff] %v674_v3  ;;  %v181_v3 = vperm.slane %v150_v32, 3  ;;  %v1712_v43 = vperm.slane %v183_v27, 1  ;;  %v1721_v63 = vperm.slane %v579_v44, 0  ;;  %v152_v32 = vld [vmem:[#allocation2 + $0x30] sm:$0xff]  ;;  %v186_v27 = vperm.slane %v151_v18, 5 }
  0x33   : > { %3075 = vst [vmem:[#allocation27_spill] sm:$0xff] %v1648_v13  ;;  %v583_v44 = vperm.slane %v151_v18, 6 }
  0x34   : > { %963 = vst [vmem:[%s1600_s26 + $0x38] sm:$0xff] %v675_v8  ;;  %v287_v8 = vmul.f32 %v1682_v60, %v1559_v6  ;;  %v1699_v24 = vperm.slane %v181_v3, 1  ;;  %v1723_v3 = vperm.slane %v184_v45, 1  ;;  %v188_v45 = vperm.slane %v152_v32, 1 }
  0x35   : > { %964 = vst [vmem:[%s1600_s26 + $0x40] sm:$0xff] %v676_v9  ;;  %v288_v9 = vmul.f32 %v1686_v62, %v1559_v6 }
  0x36   : > { %3076 = vst [vmem:[#allocation28_spill] sm:$0xff] %v1657_v30  ;;  %v289_v42 = vmul.f32 %v1699_v24, %v1559_v6 }
  0x37   : > { %3077 = vst [vmem:[#allocation29_spill] sm:$0xff] %v1659_v31  ;;  %v684_v29 = vadd.f32 %v1691_v0, %v288_v9  ;;  %v1728_v9 = vperm.slane %v185_v48, 1 }
  0x38   : > { %3078 = vst [vmem:[#allocation30_spill] sm:$0xff] %v1662_v35  ;;  %v685_v58 = vadd.f32 %v1701_v26, %v289_v42  ;;  %v187_v42 = vperm.slane %v151_v18, 7 }
  0x39   : > { %3079 = vst [vmem:[#allocation31_spill] sm:$0xff] %v1664_v36 }
  0x3a   : > { %3080 = vst [vmem:[#allocation32_spill] sm:$0xff] %v1666_v37 }
  0x3b   : > { %965 = vst [vmem:[%s1600_s26 + $0x48] sm:$0xff] %v677_v28  ;;  %v683_v28 = vadd.f32 %v1684_v61, %v287_v8  ;;  %v1726_v8 = vperm.slane %v580_v47, 0  ;;  %v1741_v47 = vperm.slane %v186_v27, 1  ;;  %v585_v27 = vperm.slane %v152_v32, 2 }
  0x3c   : > { %966 = vst [vmem:[%s1600_s26 + $0x50] sm:$0xff] %v678_v34  ;;  %v1705_v34 = vperm.slane %v182_v12, 1 }
  0x3d   : > { %967 = vst [vmem:[%s1600_s26 + $0x58] sm:$0xff] %v679_v40  ;;  %v1707_v40 = vperm.slane %v578_v14, 0 }
  0x3e   : > { %3081 = vst [vmem:[#allocation33_spill] sm:$0xff] %v1677_v52  ;;  %v290_v46 = vmul.f32 %v1705_v34, %v1559_v6 }
  0x3f   : > { %3082 = vst [vmem:[#allocation34_spill] sm:$0xff] %v1679_v56 }
  0x40   : > { %3083 = vst [vmem:[#allocation35_spill] sm:$0xff] %v1682_v60  ;;  %v686_v7 = vadd.f32 %v1707_v40, %v290_v46 }
  0x41   : > { %3084 = vst [vmem:[#allocation36_spill] sm:$0xff] %v1684_v61 }
  0x42   : > { %3085 = vst [vmem:[#allocation37_spill] sm:$0xff] %v1686_v62 }
  0x43   : > { %968 = vst [vmem:[%s1600_s26 + $0x60] sm:$0xff] %v680_v51  ;;  %v581_v51 = vperm.slane %v151_v18, 2 }
  0x44   : > { %3086 = vst [vmem:[#allocation38_spill] sm:$0xff] %v1691_v0 }
  0x45   : > { %969 = vst [vmem:[%s1600_s26 + $0x68] sm:$0xff] %v681_v59  ;;  %v291_v59 = vmul.f32 %v1712_v43, %v1559_v6  ;;  %v1730_v12 = vperm.slane %v581_v51, 0  ;;  %v584_v51 = vperm.slane %v152_v32, 0 }
  0x46   : > { %3087 = vst [vmem:[#allocation39_spill] sm:$0xff] %v1699_v24 }
  0x47   : > { %3088 = vst [vmem:[#allocation40_spill] sm:$0xff] %v1701_v26  ;;  %v687_v14 = vadd.f32 %v1721_v63, %v291_v59  ;;  %v1746_v59 = vperm.slane %v187_v42, 1  ;;  %v190_v42 = vperm.slane %v152_v32, 5 }
  0x48   : > { %3089 = vst [vmem:[#allocation41_spill] sm:$0xff] %v1705_v34 }
  0x49   : > { %3090 = vst [vmem:[#allocation42_spill] sm:$0xff] %v1707_v40 }
  0x4a   : > { %970 = vst [vmem:[%s1600_s26 + $0x70] sm:$0xff] %v682_v23  ;;  %v292_v23 = vmul.f32 %v1723_v3, %v1559_v6 }
  0x4b   : > { %3091 = vst [vmem:[#allocation43_spill] sm:$0xff] %v1712_v43 }
  0x4c   : > { %971 = vst [vmem:[%s1600_s26 + $0x78] sm:$0xff] %v683_v28  ;;  %v582_v28 = vperm.slane %v151_v18, 4  ;;  %v688_v46 = vadd.f32 %v1726_v8, %v292_v23  ;;  %v294_v18 = vmul.f32 %v1741_v47, %v1559_v6  ;;  %v189_v23 = vperm.slane %v152_v32, 3 }
  0x4d   : > { %972 = vst [vmem:[%s1600_s26 + $0x80] sm:$0xff] %v684_v29  ;;  %v293_v29 = vmul.f32 %v1728_v9, %v1559_v6 }
  0x4e   : > { %3092 = vst [vmem:[#allocation44_spill] sm:$0xff] %v1721_v63  ;;  %v1743_v48 = vperm.slane %v582_v28, 0  ;;  %v1750_v63 = vperm.slane %v188_v45, 1  ;;  %v295_v28 = vmul.f32 %v1746_v59, %v1559_v6  ;;  %v153_v45 = vld [vmem:[#allocation2 + $0x38] sm:$0xff] }
  0x4f   : > { %3093 = vst [vmem:[#allocation45_spill] sm:$0xff] %v1723_v3 }
  0x50   : > { %3094 = vst [vmem:[#allocation46_spill] sm:$0xff] %v1726_v8  ;;  %v191_v8 = vperm.slane %v152_v32, 7 }
  0x51   : > { %3095 = vst [vmem:[#allocation47_spill] sm:$0xff] %v1728_v9 }
  0x52   : > { %3096 = vst [vmem:[#allocation48_spill] sm:$0xff] %v1730_v12  ;;  %v1776_v9 = vperm.slane %v191_v8, 1 }
  0x53   : > { %973 = vst [vmem:[%s1600_s26 + $0x88] sm:$0xff] %v685_v58  ;;  %v689_v58 = vadd.f32 %v1730_v12, %v293_v29  ;;  %v296_v29 = vmul.f32 %v1750_v63, %v1559_v6  ;;  %v1763_v12 = vperm.slane %v189_v23, 1  ;;  %v192_v23 = vperm.slane %v153_v45, 1 }
  0x54   : > { %974 = vst [vmem:[%s1600_s26 + $0x90] sm:$0xff] %v686_v7  ;;  %v1748_v7 = vperm.slane %v583_v44, 0  ;;  %v586_v44 = vperm.slane %v152_v32, 4 }
  0x55   : > { %975 = vst [vmem:[%s1600_s26 + $0x98] sm:$0xff] %v687_v14  ;;  %v1755_v14 = vperm.slane %v584_v51, 0  ;;  %v1765_v51 = vperm.slane %v585_v27, 0  ;;  %v1787_v8 = vperm.slane %v192_v23, 1  ;;  %v590_v23 = vperm.slane %v153_v45, 4 }
  0x56   : > { %3097 = vst [vmem:[#allocation49_spill] sm:$0xff] %v1741_v47  ;;  %v1771_v40 = vperm.slane %v586_v44, 0  ;;  %v299_v44 = vmul.f32 %v1776_v9, %v1559_v6 }
  0x57   : > { %3098 = vst [vmem:[#allocation50_spill] sm:$0xff] %v1743_v48  ;;  %v692_v47 = vadd.f32 %v1755_v14, %v296_v29  ;;  %v589_v29 = vperm.slane %v153_v45, 2 }
  0x58   : > { %3099 = vst [vmem:[#allocation51_spill] sm:$0xff] %v1746_v59  ;;  %v1769_v59 = vperm.slane %v190_v42, 1 }
  0x59   : > { %3100 = vst [vmem:[#allocation52_spill] sm:$0xff] %v1748_v7 }
  0x5a   : > { %3101 = vst [vmem:[#allocation53_spill] sm:$0xff] %v1750_v63  ;;  %v297_v63 = vmul.f32 %v1763_v12, %v1559_v6  ;;  %v298_v27 = vmul.f32 %v1769_v59, %v1559_v6 }
  0x5b   : > { %976 = vst [vmem:[%s1600_s26 + $0xa0] sm:$0xff] %v688_v46  ;;  %v690_v46 = vadd.f32 %v1743_v48, %v294_v18  ;;  %v587_v18 = vperm.slane %v152_v32, 6  ;;  %v154_v32 = vld [vmem:[#allocation2 + $0x40] sm:$0xff]  ;;  %v1794_v48 = vperm.slane %v589_v29, 0 }
  0x5c   : > { %3102 = vst [vmem:[#allocation54_spill] sm:$0xff] %v1755_v14  ;;  %v693_v42 = vadd.f32 %v1765_v51, %v297_v63 }
  0x5d   : > { %977 = vst [vmem:[%s1600_s26 + $0xa8] sm:$0xff] %v689_v58  ;;  %v691_v58 = vadd.f32 %v1748_v7, %v295_v28  ;;  %v588_v28 = vperm.slane %v153_v45, 0  ;;  %v193_v7 = vperm.slane %v153_v45, 3 }
  0x5e   : > { %3103 = vst [vmem:[#allocation55_spill] sm:$0xff] %v1763_v12 }
  0x5f   : > { %3104 = vst [vmem:[#allocation56_spill] sm:$0xff] %v1765_v51  ;;  %v1790_v14 = vperm.slane %v588_v28, 0  ;;  %v591_v28 = vperm.slane %v153_v45, 6 }
  0x60   : > { %3105 = vst [vmem:[#allocation57_spill] sm:$0xff] %v1769_v59  ;;  %v1792_v59 = vperm.slane %v193_v7, 1  ;;  %v196_v7 = vperm.slane %v154_v32, 1 }
  0x61   : > { %3106 = vst [vmem:[#allocation58_spill] sm:$0xff] %v1771_v40 }
  0x62   : > { %978 = vst [vmem:[%s1600_s26 + $0xb0] sm:$0xff] %v690_v46  ;;  %v1785_v46 = vperm.slane %v587_v18, 0  ;;  %v194_v18 = vperm.slane %v153_v45, 5  ;;  %v301_v51 = vmul.f32 %v1792_v59, %v1559_v6 }
  0x63   : > { %3107 = vst [vmem:[#allocation59_spill] sm:$0xff] %v1776_v9  ;;  %v1814_v9 = vperm.slane %v196_v7, 1 }
  0x64   : > { %979 = vst [vmem:[%s1600_s26 + $0xb8] sm:$0xff] %v691_v58  ;;  %v694_v58 = vadd.f32 %v1771_v40, %v298_v27  ;;  %v695_v63 = vadd.f32 %v1785_v46, %v299_v44  ;;  %v195_v27 = vperm.slane %v153_v45, 7  ;;  %v1807_v44 = vperm.slane %v590_v23, 0 }
  0x65   : > { %980 = vst [vmem:[%s1600_s26 + $0xc0] sm:$0xff] %v692_v47  ;;  %v300_v47 = vmul.f32 %v1787_v8, %v1559_v6  ;;  %v697_v40 = vadd.f32 %v1794_v48, %v301_v51  ;;  %v304_v51 = vmul.f32 %v1814_v9, %v1559_v6 }
  0x66   : > { %3108 = vst [vmem:[#allocation60_spill] sm:$0xff] %v1785_v46  ;;  %v592_v46 = vperm.slane %v154_v32, 0 }
  0x67   : > { %3109 = vst [vmem:[#allocation61_spill] sm:$0xff] %v1787_v8  ;;  %v696_v29 = vadd.f32 %v1790_v14, %v300_v47  ;;  %v1810_v8 = vperm.slane %v195_v27, 1  ;;  %v197_v47 = vperm.slane %v154_v32, 3  ;;  %v198_v27 = vperm.slane %v154_v32, 5 }
  0x68   : > { %3110 = vst [vmem:[#allocation62_spill] sm:$0xff] %v1790_v14 }
  0x69   : > { %3111 = vst [vmem:[#allocation63_spill] sm:$0xff] %v1792_v59  ;;  %v303_v23 = vmul.f32 %v1810_v8, %v1559_v6 }
  0x6a   : > { %3112 = vst [vmem:[#allocation64_spill] sm:$0xff] %v1794_v48  ;;  %v199_v48 = vperm.slane %v154_v32, 7 }
  0x6b   : > { %981 = vst [vmem:[%s1600_s26 + $0xc8] sm:$0xff] %v693_v42  ;;  %v1805_v42 = vperm.slane %v194_v18, 1  ;;  %v593_v18 = vperm.slane %v154_v32, 2 }
  0x6c   : > { %982 = vst [vmem:[%s1600_s26 + $0xd0] sm:$0xff] %v694_v58  ;;  %v1812_v58 = vperm.slane %v591_v28, 0  ;;  %v594_v28 = vperm.slane %v154_v32, 4 }
  0x6d   : > { %983 = vst [vmem:[%s1600_s26 + $0xd8] sm:$0xff] %v695_v63  ;;  %v302_v45 = vmul.f32 %v1805_v42, %v1559_v6  ;;  %v1819_v63 = vperm.slane %v592_v46, 0  ;;  %v1829_v46 = vperm.slane %v593_v18, 0  ;;  %v113_v18 = vadd.s32 8, %v1554_v2 }
  0x6e   : > { %3113 = vst [vmem:[#allocation65_spill] sm:$0xff] %v1805_v42  ;;  %v699_v14 = vadd.f32 %v1812_v58, %v303_v23  ;;  %v1835_v42 = vperm.slane %v594_v28, 0 }
  0x6f   : > { %3114 = vst [vmem:[#allocation66_spill] sm:$0xff] %v1810_v8  ;;  %v698_v7 = vadd.f32 %v1807_v44, %v302_v45  ;;  %v1833_v8 = vperm.slane %v198_v27, 1  ;;  %v1840_v45 = vperm.slane %v199_v48, 1 }
  0x70   : > { %3115 = vst [vmem:[#allocation67_spill] sm:$0xff] %v1814_v9 }
  0x71   : > { %984 = vst [vmem:[%s1600_s26 + $0xe0] sm:$0xff] %v696_v29  ;;  %v1827_v29 = vperm.slane %v197_v47, 1  ;;  %v595_v47 = vperm.slane %v154_v32, 6  ;;  %v306_v23 = vmul.f32 %v1833_v8, %v1559_v6  ;;  %v307_v27 = vmul.f32 %v1840_v45, %v1559_v6 }
  0x72   : > { %3116 = vst [vmem:[#allocation68_spill] sm:$0xff] %v1819_v63 }
  0x73   : > { %985 = vst [vmem:[%s1600_s26 + $0xe8] sm:$0xff] %v697_v40  ;;  %v700_v40 = vadd.f32 %v1819_v63, %v304_v51  ;;  %v305_v9 = vmul.f32 %v1827_v29, %v1559_v6  ;;  %v1850_v28 = vperm.slane %v595_v47, 0  ;;  %v702_v48 = vadd.f32 %v1835_v42, %v306_v23 }
  0x74   : > { %3117 = vst [vmem:[#allocation69_spill] sm:$0xff] %v1827_v29 }
  0x75   : > { %986 = vst [vmem:[%s1600_s26 + $0xf0] sm:$0xff] %v698_v7  ;;  %v701_v51 = vadd.f32 %v1829_v46, %v305_v9  ;;  %v123_v7 = vadd.s32 %v1552_v1, %v113_v18  ;;  %v703_v32 = vadd.f32 %v1850_v28, %v307_v27 }
  0x76   : > { %987 = vst [vmem:[%s1600_s26 + $0xf8] sm:$0xff] %v699_v14 }
  0x77   : > { %988 = vst [vmem:[%s1600_s26 + $0x100] sm:$0xff] %v700_v40  ;;  %v131_v63 = vcvt.s32.f32 %v123_v7 }
  0x78   : > { %989 = vst [vmem:[%s1600_s26 + $0x108] sm:$0xff] %v701_v51 }
  0x79   : > { %990 = vst [vmem:[%s1600_s26 + $0x110] sm:$0xff] %v702_v48  ;;  %v1858_v14 = vmul.f32 2.0, %v131_v63 }
  0x7a   : > { %991 = vst [vmem:[%s1600_s26 + $0x118] sm:$0xff] %v703_v32 }
  0x7b   : > { %v308_v9 = vmul.f32 %v1565_v15, %v1858_v14  ;;  %v309_v6 = vmul.f32 %v1569_v17, %v1858_v14  ;;  %v310_v40 = vmul.f32 %v1573_v20, %v1858_v14  ;;  %v311_v47 = vmul.f32 %v1577_v22, %v1858_v14 }
  0x7c   : > { %v312_v18 = vmul.f32 %v1591_v33, %v1858_v14  ;;  %v313_v63 = vmul.f32 %v1597_v39, %v1858_v14  ;;  %v314_v7 = vmul.f32 %v1612_v49, %v1858_v14  ;;  %v315_v32 = vmul.f32 %v1618_v53, %v1858_v14 }
  0x7d   : > { %v704_v23 = vadd.f32 %v1567_v16, %v308_v9  ;;  %v705_v51 = vadd.f32 %v1571_v19, %v309_v6  ;;  %v706_v27 = vadd.f32 %v1575_v21, %v310_v40  ;;  %v707_v48 = vadd.f32 %v1583_v25, %v311_v47 }
  0x7e   : > { %v708_v39 = vadd.f32 %v1595_v38, %v312_v18  ;;  %v316_v9 = vmul.f32 %v1622_v55, %v1858_v14  ;;  %v709_v6 = vadd.f32 %v1605_v41, %v313_v63  ;;  %v317_v40 = vmul.f32 %v1635_v4, %v1858_v14 }
  0x7f   : > { %992 = vst [vmem:[%s1600_s26 + $0x120] sm:$0xff] %v704_v23  ;;  %v710_v47 = vadd.f32 %v1614_v50, %v314_v7  ;;  %v318_v53 = vmul.f32 %v1641_v10, %v1858_v14  ;;  %v711_v18 = vadd.f32 %v1620_v54, %v315_v32  ;;  %v319_v23 = vmul.f32 %v1648_v13, %v1858_v14 }
  0x80   : > { %993 = vst [vmem:[%s1600_s26 + $0x128] sm:$0xff] %v705_v51  ;;  %v712_v63 = vadd.f32 %v1627_v57, %v316_v9  ;;  %v320_v51 = vmul.f32 %v1659_v31, %v1858_v14  ;;  %v321_v7 = vmul.f32 %v1664_v36, %v1858_v14  ;;  %v322_v32 = vmul.f32 %v1677_v52, %v1858_v14 }
  0x81   : > { %994 = vst [vmem:[%s1600_s26 + $0x130] sm:$0xff] %v706_v27  ;;  %v713_v27 = vadd.f32 %v1637_v5, %v317_v40  ;;  %v323_v9 = vmul.f32 %v1682_v60, %v1858_v14  ;;  %v324_v40 = vmul.f32 %v1686_v62, %v1858_v14 }
  0x82   : > { %995 = vst [vmem:[%s1600_s26 + $0x138] sm:$0xff] %v707_v48  ;;  %v714_v48 = vadd.f32 %v1643_v11, %v318_v53  ;;  %v717_v53 = vadd.f32 %v1666_v37, %v321_v7  ;;  %v328_v7 = vmul.f32 %v1723_v3, %v1858_v14 }
  0x83   : > { %996 = vst [vmem:[%s1600_s26 + $0x140] sm:$0xff] %v708_v39  ;;  %v715_v39 = vadd.f32 %v1657_v30, %v319_v23  ;;  %v326_v23 = vmul.f32 %v1705_v34, %v1858_v14 }
  0x84   : > { %997 = vst [vmem:[%s1600_s26 + $0x148] sm:$0xff] %v709_v6  ;;  %v716_v6 = vadd.f32 %v1662_v35, %v320_v51  ;;  %v327_v51 = vmul.f32 %v1712_v43, %v1858_v14 }
  0x85   : > { %998 = vst [vmem:[%s1600_s26 + $0x150] sm:$0xff] %v710_v47  ;;  %v325_v47 = vmul.f32 %v1699_v24, %v1858_v14 }
  0x86   : > { %999 = vst [vmem:[%s1600_s26 + $0x158] sm:$0xff] %v711_v18  ;;  %v718_v18 = vadd.f32 %v1679_v56, %v322_v32 }
  0x87   : > { %1000 = vst [vmem:[%s1600_s26 + $0x160] sm:$0xff] %v712_v63  ;;  %v719_v63 = vadd.f32 %v1684_v61, %v323_v9  ;;  %v721_v32 = vadd.f32 %v1701_v26, %v325_v47  ;;  %v3119_v9 = vld [vmem:[#allocation42_spill] sm:$0xff]  ;;  %v3124_v26 = vld [vmem:[#allocation53_spill] sm:$0xff] }
  0x88   : > { %1001 = vst [vmem:[%s1600_s26 + $0x168] sm:$0xff] %v713_v27  ;;  %v720_v27 = vadd.f32 %v1691_v0, %v324_v40  ;;  %v722_v43 = vadd.f32 %v3119_v9, %v326_v23  ;;  %v3121_v0 = vld [vmem:[#allocation44_spill] sm:$0xff]  ;;  %v3123_v61 = vld [vmem:[#allocation46_spill] sm:$0xff] }
  0x89   : > { %1002 = vst [vmem:[%s1600_s26 + $0x170] sm:$0xff] %v714_v48  ;;  %v114_v48 = vadd.s32 16, %v1554_v2  ;;  %v723_v3 = vadd.f32 %v3121_v0, %v327_v51  ;;  %v3122_v2 = vld [vmem:[#allocation51_spill] sm:$0xff]  ;;  %v724_v47 = vadd.f32 %v3123_v61, %v328_v7  ;;  %v3125_v23 = vld [vmem:[#allocation48_spill] sm:$0xff]  ;;  %v3126_v51 = vld [vmem:[#allocation50_spill] sm:$0xff] }
  0x8a   : > { %1003 = vst [vmem:[%s1600_s26 + $0x178] sm:$0xff] %v715_v39  ;;  %v3118_v39 = vld [vmem:[#allocation47_spill] sm:$0xff]  ;;  %v3128_v61 = vld [vmem:[#allocation52_spill] sm:$0xff] }
  0x8b   : > { %1004 = vst [vmem:[%s1600_s26 + $0x180] sm:$0xff] %v716_v6  ;;  %v329_v34 = vmul.f32 %v3118_v39, %v1858_v14  ;;  %v3120_v6 = vld [vmem:[#allocation49_spill] sm:$0xff]  ;;  %v124_v39 = vadd.s32 %v1552_v1, %v114_v48  ;;  %v3129_v48 = vld [vmem:[#allocation59_spill] sm:$0xff]  ;;  %v3130_v1 = vld [vmem:[#allocation54_spill] sm:$0xff] }
  0x8c   : > { %1005 = vst [vmem:[%s1600_s26 + $0x188] sm:$0xff] %v717_v53  ;;  %v330_v40 = vmul.f32 %v3120_v6, %v1858_v14  ;;  %v331_v53 = vmul.f32 %v3122_v2, %v1858_v14 }
  0x8d   : > { %1006 = vst [vmem:[%s1600_s26 + $0x190] sm:$0xff] %v718_v18  ;;  %v332_v18 = vmul.f32 %v3124_v26, %v1858_v14  ;;  %v725_v6 = vadd.f32 %v3125_v23, %v329_v34  ;;  %v3131_v23 = vld [vmem:[#allocation61_spill] sm:$0xff] }
  0x8e   : > { %1007 = vst [vmem:[%s1600_s26 + $0x198] sm:$0xff] %v719_v63  ;;  %v333_v63 = vmul.f32 %v1763_v12, %v1858_v14  ;;  %v726_v2 = vadd.f32 %v3126_v51, %v330_v40  ;;  %v727_v26 = vadd.f32 %v3128_v61, %v331_v53  ;;  %v132_v12 = vcvt.s32.f32 %v124_v39  ;;  %v3132_v40 = vld [vmem:[#allocation56_spill] sm:$0xff]  ;;  %v3133_v53 = vld [vmem:[#allocation58_spill] sm:$0xff] }
  0x8f   : > { %1008 = vst [vmem:[%s1600_s26 + $0x1a0] sm:$0xff] %v720_v27  ;;  %v3127_v27 = vld [vmem:[#allocation57_spill] sm:$0xff]  ;;  %v728_v34 = vadd.f32 %v3130_v1, %v332_v18  ;;  %v3135_v18 = vld [vmem:[#allocation60_spill] sm:$0xff]  ;;  %v3136_v39 = vld [vmem:[#allocation66_spill] sm:$0xff] }
  0x90   : > { %1009 = vst [vmem:[%s1600_s26 + $0x1a8] sm:$0xff] %v721_v32  ;;  %v334_v7 = vmul.f32 %v3127_v27, %v1858_v14  ;;  %v335_v32 = vmul.f32 %v3129_v48, %v1858_v14  ;;  %v729_v51 = vadd.f32 %v3132_v40, %v333_v63  ;;  %v1982_v40 = vmul.f32 2.0, %v132_v12 }
  0x91   : > { %1010 = vst [vmem:[%s1600_s26 + $0x1b0] sm:$0xff] %v722_v43  ;;  %v336_v43 = vmul.f32 %v3131_v23, %v1858_v14  ;;  %v3137_v23 = vld [vmem:[#allocation62_spill] sm:$0xff]  ;;  %v343_v12 = vmul.f32 %v1840_v45, %v1858_v14 }
  0x92   : > { %1011 = vst [vmem:[%s1600_s26 + $0x1b8] sm:$0xff] %v723_v3  ;;  %v337_v3 = vmul.f32 %v1792_v59, %v1858_v14  ;;  %v730_v61 = vadd.f32 %v3133_v53, %v334_v7  ;;  %v731_v1 = vadd.f32 %v3135_v18, %v335_v32  ;;  %v3138_v59 = vld [vmem:[#allocation67_spill] sm:$0xff]  ;;  %v3139_v7 = vld [vmem:[#allocation64_spill] sm:$0xff] }
  0x93   : > { %1012 = vst [vmem:[%s1600_s26 + $0x1c0] sm:$0xff] %v724_v47  ;;  %v3134_v47 = vld [vmem:[#allocation65_spill] sm:$0xff]  ;;  %v732_v63 = vadd.f32 %v3137_v23, %v336_v43 }
  0x94   : > { %1013 = vst [vmem:[%s1600_s26 + $0x1c8] sm:$0xff] %v725_v6  ;;  %v338_v48 = vmul.f32 %v3134_v47, %v1858_v14  ;;  %v339_v6 = vmul.f32 %v3136_v39, %v1858_v14  ;;  %v733_v47 = vadd.f32 %v3139_v7, %v337_v3 }
  0x95   : > { %1014 = vst [vmem:[%s1600_s26 + $0x1d0] sm:$0xff] %v726_v2  ;;  %v340_v2 = vmul.f32 %v3138_v59, %v1858_v14 }
  0x96   : > { %1015 = vst [vmem:[%s1600_s26 + $0x1d8] sm:$0xff] %v727_v26  ;;  %v341_v26 = vmul.f32 %v1827_v29, %v1858_v14  ;;  %v734_v32 = vadd.f32 %v1807_v44, %v338_v48  ;;  %v735_v43 = vadd.f32 %v1812_v58, %v339_v6  ;;  %v344_v29 = vmul.f32 %v1565_v15, %v1982_v40 }
  0x97   : > { %1016 = vst [vmem:[%s1600_s26 + $0x1e0] sm:$0xff] %v728_v34  ;;  %v342_v34 = vmul.f32 %v1833_v8, %v1858_v14  ;;  %v345_v48 = vmul.f32 %v1569_v17, %v1982_v40  ;;  %v346_v14 = vmul.f32 %v1573_v20, %v1982_v40  ;;  %v739_v6 = vadd.f32 %v1850_v28, %v343_v12 }
  0x98   : > { %1017 = vst [vmem:[%s1600_s26 + $0x1e8] sm:$0xff] %v729_v51  ;;  %v3140_v51 = vld [vmem:[#allocation68_spill] sm:$0xff]  ;;  %v350_v12 = vmul.f32 %v1612_v49, %v1982_v40 }
  0x99   : > { %1018 = vst [vmem:[%s1600_s26 + $0x1f0] sm:$0xff] %v730_v61  ;;  %v736_v3 = vadd.f32 %v3140_v51, %v340_v2  ;;  %v737_v61 = vadd.f32 %v1829_v46, %v341_v26  ;;  %v348_v2 = vmul.f32 %v1591_v33, %v1982_v40  ;;  %v741_v26 = vadd.f32 %v1571_v19, %v345_v48 }
  0x9a   : > { %1019 = vst [vmem:[%s1600_s26 + $0x1f8] sm:$0xff] %v731_v1  ;;  %v738_v1 = vadd.f32 %v1835_v42, %v342_v34  ;;  %v352_v48 = vmul.f32 %v1622_v55, %v1982_v40 }
  0x9b   : > { %1020 = vst [vmem:[%s1600_s26 + $0x200] sm:$0xff] %v732_v63  ;;  %v347_v63 = vmul.f32 %v1577_v22, %v1982_v40 }
  0x9c   : > { %1021 = vst [vmem:[%s1600_s26 + $0x208] sm:$0xff] %v733_v47  ;;  %v740_v47 = vadd.f32 %v1567_v16, %v344_v29 }
  0x9d   : > { %1022 = vst [vmem:[%s1600_s26 + $0x210] sm:$0xff] %v734_v32  ;;  %v3141_v32 = vld [vmem:[#allocation15_spill] sm:$0xff]  ;;  %v743_v29 = vadd.f32 %v1583_v25, %v347_v63  ;;  %v354_v63 = vmul.f32 %v1641_v10, %v1982_v40 }
  0x9e   : > { %1023 = vst [vmem:[%s1600_s26 + $0x218] sm:$0xff] %v735_v43  ;;  %v349_v34 = vmul.f32 %v3141_v32, %v1982_v40  ;;  %v742_v43 = vadd.f32 %v1575_v21, %v346_v14  ;;  %v353_v14 = vmul.f32 %v1635_v4, %v1982_v40 }
  0x9f   : > { %1024 = vst [vmem:[%s1600_s26 + $0x220] sm:$0xff] %v736_v3  ;;  %v3142_v3 = vld [vmem:[#allocation19_spill] sm:$0xff] }
  0xa0   : > { %1025 = vst [vmem:[%s1600_s26 + $0x228] sm:$0xff] %v737_v61  ;;  %v351_v33 = vmul.f32 %v3142_v3, %v1982_v40  ;;  %v744_v61 = vadd.f32 %v1595_v38, %v348_v2  ;;  %v355_v2 = vmul.f32 %v1648_v13, %v1982_v40 }
  0xa1   : > { %1026 = vst [vmem:[%s1600_s26 + $0x230] sm:$0xff] %v738_v1  ;;  %v745_v1 = vadd.f32 %v1605_v41, %v349_v34  ;;  %v356_v34 = vmul.f32 %v1659_v31, %v1982_v40 }
  0xa2   : > { %1027 = vst [vmem:[%s1600_s26 + $0x238] sm:$0xff] %v739_v6  ;;  %v746_v6 = vadd.f32 %v1614_v50, %v350_v12  ;;  %v357_v12 = vmul.f32 %v1664_v36, %v1982_v40 }
  0xa3   : > { %1028 = vst [vmem:[%s1600_s26 + $0x240] sm:$0xff] %v740_v47  ;;  %v747_v47 = vadd.f32 %v1620_v54, %v351_v33  ;;  %v750_v33 = vadd.f32 %v1643_v11, %v354_v63  ;;  %v361_v63 = vmul.f32 %v1699_v24, %v1982_v40  ;;  %v3148_v24 = vld [vmem:[#allocation9_spill] sm:$0xff] }
  0xa4   : > { %1029 = vst [vmem:[%s1600_s26 + $0x248] sm:$0xff] %v741_v26  ;;  %v748_v26 = vadd.f32 %v1627_v57, %v352_v48  ;;  %v359_v48 = vmul.f32 %v1682_v60, %v1982_v40  ;;  %v3144_v60 = vld [vmem:[#allocation36_spill] sm:$0xff] }
  0xa5   : > { %1030 = vst [vmem:[%s1600_s26 + $0x250] sm:$0xff] %v742_v43  ;;  %v749_v43 = vadd.f32 %v1637_v5, %v353_v14  ;;  %v360_v14 = vmul.f32 %v1686_v62, %v1982_v40  ;;  %v3145_v62 = vld [vmem:[#allocation43_spill] sm:$0xff] }
  0xa6   : > { %1031 = vst [vmem:[%s1600_s26 + $0x258] sm:$0xff] %v743_v29  ;;  %v358_v29 = vmul.f32 %v1677_v52, %v1982_v40 }
  0xa7   : > { %1032 = vst [vmem:[%s1600_s26 + $0x260] sm:$0xff] %v744_v61  ;;  %v751_v61 = vadd.f32 %v1657_v30, %v355_v2  ;;  %v3143_v2 = vld [vmem:[#allocation41_spill] sm:$0xff]  ;;  %v115_v30 = vadd.s32 24, %v3148_v24  ;;  %v3152_v24 = vld [vmem:[#allocation51_spill] sm:$0xff] }
  0xa8   : > { %1033 = vst [vmem:[%s1600_s26 + $0x268] sm:$0xff] %v745_v1  ;;  %v752_v1 = vadd.f32 %v1662_v35, %v356_v34  ;;  %v755_v34 = vadd.f32 %v3144_v60, %v359_v48  ;;  %v3146_v35 = vld [vmem:[#allocation38_spill] sm:$0xff] }
  0xa9   : > { %1034 = vst [vmem:[%s1600_s26 + $0x270] sm:$0xff] %v746_v6  ;;  %v753_v6 = vadd.f32 %v1666_v37, %v357_v12  ;;  %v756_v12 = vadd.f32 %v3146_v35, %v360_v14  ;;  %v3147_v37 = vld [vmem:[#allocation45_spill] sm:$0xff]  ;;  %v3153_v35 = vld [vmem:[#allocation46_spill] sm:$0xff] }
  0xaa   : > { %1035 = vst [vmem:[%s1600_s26 + $0x278] sm:$0xff] %v747_v47  ;;  %v754_v47 = vadd.f32 %v1679_v56, %v358_v29  ;;  %v3149_v29 = vld [vmem:[#allocation40_spill] sm:$0xff] }
  0xab   : > { %1036 = vst [vmem:[%s1600_s26 + $0x280] sm:$0xff] %v748_v26  ;;  %v362_v26 = vmul.f32 %v3143_v2, %v1982_v40  ;;  %v757_v2 = vadd.f32 %v3149_v29, %v361_v63  ;;  %v3154_v29 = vld [vmem:[#allocation53_spill] sm:$0xff] }
  0xac   : > { %1037 = vst [vmem:[%s1600_s26 + $0x288] sm:$0xff] %v749_v43  ;;  %v363_v43 = vmul.f32 %v3145_v62, %v1982_v40 }
  0xad   : > { %1038 = vst [vmem:[%s1600_s26 + $0x290] sm:$0xff] %v750_v33  ;;  %v364_v33 = vmul.f32 %v3147_v37, %v1982_v40  ;;  %v758_v48 = vadd.f32 %v3119_v9, %v362_v26  ;;  %v3156_v26 = vld [vmem:[#allocation48_spill] sm:$0xff] }
  0xae   : > { %1039 = vst [vmem:[%s1600_s26 + $0x298] sm:$0xff] %v751_v61  ;;  %v3150_v61 = vld [vmem:[#allocation47_spill] sm:$0xff]  ;;  %v759_v37 = vadd.f32 %v3121_v0, %v363_v43  ;;  %v3158_v43 = vld [vmem:[#allocation50_spill] sm:$0xff] }
  0xaf   : > { %1040 = vst [vmem:[%s1600_s26 + $0x2a0] sm:$0xff] %v752_v1  ;;  %v365_v56 = vmul.f32 %v3150_v61, %v1982_v40  ;;  %v3151_v1 = vld [vmem:[#allocation49_spill] sm:$0xff]  ;;  %v760_v63 = vadd.f32 %v3153_v35, %v364_v33  ;;  %v3155_v61 = vld [vmem:[#allocation8_spill] sm:$0xff] }
  0xb0   : > { %1041 = vst [vmem:[%s1600_s26 + $0x2a8] sm:$0xff] %v753_v6  ;;  %v366_v14 = vmul.f32 %v3151_v1, %v1982_v40  ;;  %v367_v6 = vmul.f32 %v3152_v24, %v1982_v40  ;;  %v125_v62 = vadd.s32 %v3155_v61, %v115_v30  ;;  %v3159_v33 = vld [vmem:[#allocation52_spill] sm:$0xff]  ;;  %v3160_v30 = vld [vmem:[#allocation59_spill] sm:$0xff]  ;;  %v3161_v61 = vld [vmem:[#allocation54_spill] sm:$0xff] }
  0xb1   : > { %1042 = vst [vmem:[%s1600_s26 + $0x2b0] sm:$0xff] %v754_v47  ;;  %v368_v47 = vmul.f32 %v3154_v29, %v1982_v40  ;;  %v761_v1 = vadd.f32 %v3156_v26, %v365_v56  ;;  %v3162_v26 = vld [vmem:[#allocation61_spill] sm:$0xff] }
  0xb2   : > { %1043 = vst [vmem:[%s1600_s26 + $0x2b8] sm:$0xff] %v755_v34  ;;  %v3157_v34 = vld [vmem:[#allocation55_spill] sm:$0xff]  ;;  %v762_v24 = vadd.f32 %v3158_v43, %v366_v14  ;;  %v763_v29 = vadd.f32 %v3159_v33, %v367_v6  ;;  %v3163_v14 = vld [vmem:[#allocation56_spill] sm:$0xff] }
  0xb3   : > { %1044 = vst [vmem:[%s1600_s26 + $0x2c0] sm:$0xff] %v756_v12  ;;  %v369_v9 = vmul.f32 %v3157_v34, %v1982_v40  ;;  %v370_v12 = vmul.f32 %v3127_v27, %v1982_v40  ;;  %v764_v56 = vadd.f32 %v3161_v61, %v368_v47  ;;  %v133_v34 = vcvt.s32.f32 %v125_v62 }
  0xb4   : > { %1045 = vst [vmem:[%s1600_s26 + $0x2c8] sm:$0xff] %v757_v2  ;;  %v371_v2 = vmul.f32 %v3160_v30, %v1982_v40  ;;  %v375_v62 = vmul.f32 %v3136_v39, %v1982_v40 }
  0xb5   : > { %1046 = vst [vmem:[%s1600_s26 + $0x2d0] sm:$0xff] %v758_v48  ;;  %v372_v48 = vmul.f32 %v3162_v26, %v1982_v40  ;;  %v765_v43 = vadd.f32 %v3163_v14, %v369_v9  ;;  %v766_v6 = vadd.f32 %v3133_v53, %v370_v12 }
  0xb6   : > { %1047 = vst [vmem:[%s1600_s26 + $0x2d8] sm:$0xff] %v759_v37  ;;  %v3164_v37 = vld [vmem:[#allocation63_spill] sm:$0xff]  ;;  %v767_v47 = vadd.f32 %v3135_v18, %v371_v2 }
  0xb7   : > { %1048 = vst [vmem:[%s1600_s26 + $0x2e0] sm:$0xff] %v760_v63  ;;  %v373_v27 = vmul.f32 %v3164_v37, %v1982_v40  ;;  %v3165_v63 = vld [vmem:[#allocation65_spill] sm:$0xff]  ;;  %v768_v9 = vadd.f32 %v3137_v23, %v372_v48  ;;  %v771_v48 = vadd.f32 %v1812_v58, %v375_v62 }
  0xb8   : > { %1049 = vst [vmem:[%s1600_s26 + $0x2e8] sm:$0xff] %v761_v1  ;;  %v374_v30 = vmul.f32 %v3165_v63, %v1982_v40  ;;  %v2130_v1 = vmul.f32 2.0, %v133_v34  ;;  %v379_v34 = vmul.f32 %v1840_v45, %v1982_v40 }
  0xb9   : > { %1050 = vst [vmem:[%s1600_s26 + $0x2f0] sm:$0xff] %v762_v24  ;;  %v376_v24 = vmul.f32 %v3138_v59, %v1982_v40  ;;  %v769_v12 = vadd.f32 %v3139_v7, %v373_v27 }
  0xba   : > { %1051 = vst [vmem:[%s1600_s26 + $0x2f8] sm:$0xff] %v763_v29  ;;  %v3166_v29 = vld [vmem:[#allocation69_spill] sm:$0xff]  ;;  %v770_v2 = vadd.f32 %v1807_v44, %v374_v30  ;;  %v775_v62 = vadd.f32 %v1850_v28, %v379_v34  ;;  %v386_v34 = vmul.f32 %v1612_v49, %v2130_v1 }
  0xbb   : > { %1052 = vst [vmem:[%s1600_s26 + $0x300] sm:$0xff] %v764_v56  ;;  %v377_v63 = vmul.f32 %v3166_v29, %v1982_v40  ;;  %v378_v56 = vmul.f32 %v1833_v8, %v1982_v40  ;;  %v772_v27 = vadd.f32 %v3140_v51, %v376_v24  ;;  %v382_v40 = vmul.f32 %v1573_v20, %v2130_v1  ;;  %v3167_v24 = vld [vmem:[#allocation13_spill] sm:$0xff] }
  0xbc   : > { %1053 = vst [vmem:[%s1600_s26 + $0x308] sm:$0xff] %v765_v43  ;;  %v380_v43 = vmul.f32 %v1565_v15, %v2130_v1 }
  0xbd   : > { %1054 = vst [vmem:[%s1600_s26 + $0x310] sm:$0xff] %v766_v6  ;;  %v773_v30 = vadd.f32 %v1829_v46, %v377_v63  ;;  %v381_v6 = vmul.f32 %v1569_v17, %v2130_v1 }
  0xbe   : > { %1055 = vst [vmem:[%s1600_s26 + $0x318] sm:$0xff] %v767_v47  ;;  %v774_v47 = vadd.f32 %v1835_v42, %v378_v56  ;;  %v776_v63 = vadd.f32 %v1567_v16, %v380_v43  ;;  %v385_v56 = vmul.f32 %v3141_v32, %v2130_v1  ;;  %v387_v43 = vmul.f32 %v3142_v3, %v2130_v1 }
  0xbf   : > { %1056 = vst [vmem:[%s1600_s26 + $0x320] sm:$0xff] %v768_v9  ;;  %v383_v9 = vmul.f32 %v1577_v22, %v2130_v1 }
  0xc0   : > { %1057 = vst [vmem:[%s1600_s26 + $0x328] sm:$0xff] %v769_v12  ;;  %v384_v12 = vmul.f32 %v3167_v24, %v2130_v1 }
  0xc1   : > { %1058 = vst [vmem:[%s1600_s26 + $0x330] sm:$0xff] %v770_v2  ;;  %v777_v2 = vadd.f32 %v1571_v19, %v381_v6  ;;  %v388_v6 = vmul.f32 %v1622_v55, %v2130_v1 }
  0xc2   : > { %1059 = vst [vmem:[%s1600_s26 + $0x338] sm:$0xff] %v771_v48  ;;  %v778_v48 = vadd.f32 %v1575_v21, %v382_v40  ;;  %v389_v40 = vmul.f32 %v1635_v4, %v2130_v1 }
  0xc3   : > { %1060 = vst [vmem:[%s1600_s26 + $0x340] sm:$0xff] %v772_v27  ;;  %v779_v27 = vadd.f32 %v1583_v25, %v383_v9  ;;  %v390_v9 = vmul.f32 %v1641_v10, %v2130_v1 }
  0xc4   : > { %1061 = vst [vmem:[%s1600_s26 + $0x348] sm:$0xff] %v773_v30  ;;  %v780_v30 = vadd.f32 %v1595_v38, %v384_v12  ;;  %v391_v12 = vmul.f32 %v1648_v13, %v2130_v1 }
  0xc5   : > { %1062 = vst [vmem:[%s1600_s26 + $0x350] sm:$0xff] %v774_v47  ;;  %v781_v47 = vadd.f32 %v1605_v41, %v385_v56  ;;  %v392_v56 = vmul.f32 %v1659_v31, %v2130_v1  ;;  %v3169_v31 = vld [vmem:[#allocation35_spill] sm:$0xff] }
  0xc6   : > { %1063 = vst [vmem:[%s1600_s26 + $0x358] sm:$0xff] %v775_v62  ;;  %v782_v62 = vadd.f32 %v1614_v50, %v386_v34  ;;  %v393_v34 = vmul.f32 %v1664_v36, %v2130_v1  ;;  %v3171_v36 = vld [vmem:[#allocation37_spill] sm:$0xff] }
  0xc7   : > { %1064 = vst [vmem:[%s1600_s26 + $0x360] sm:$0xff] %v776_v63  ;;  %v783_v63 = vadd.f32 %v1620_v54, %v387_v43  ;;  %v394_v43 = vmul.f32 %v1677_v52, %v2130_v1  ;;  %v3173_v52 = vld [vmem:[#allocation39_spill] sm:$0xff] }
  0xc8   : > { %1065 = vst [vmem:[%s1600_s26 + $0x368] sm:$0xff] %v777_v2  ;;  %v784_v2 = vadd.f32 %v1627_v57, %v388_v6  ;;  %v395_v57 = vmul.f32 %v3169_v31, %v2130_v1  ;;  %v3175_v31 = vld [vmem:[#allocation41_spill] sm:$0xff] }
  0xc9   : > { %1066 = vst [vmem:[%s1600_s26 + $0x370] sm:$0xff] %v778_v48  ;;  %v785_v48 = vadd.f32 %v1637_v5, %v389_v40  ;;  %v396_v5 = vmul.f32 %v3171_v36, %v2130_v1  ;;  %v3176_v36 = vld [vmem:[#allocation43_spill] sm:$0xff] }
  0xca   : > { %1067 = vst [vmem:[%s1600_s26 + $0x378] sm:$0xff] %v779_v27  ;;  %v786_v27 = vadd.f32 %v1643_v11, %v390_v9  ;;  %v397_v11 = vmul.f32 %v3173_v52, %v2130_v1  ;;  %v3179_v52 = vld [vmem:[#allocation9_spill] sm:$0xff] }
  0xcb   : > { %1068 = vst [vmem:[%s1600_s26 + $0x380] sm:$0xff] %v780_v30  ;;  %v3168_v30 = vld [vmem:[#allocation28_spill] sm:$0xff] }
  0xcc   : > { %1069 = vst [vmem:[%s1600_s26 + $0x388] sm:$0xff] %v781_v47  ;;  %v787_v6 = vadd.f32 %v3168_v30, %v391_v12  ;;  %v3170_v47 = vld [vmem:[#allocation30_spill] sm:$0xff]  ;;  %v116_v30 = vadd.s32 32, %v3179_v52  ;;  %v3184_v52 = vld [vmem:[#allocation51_spill] sm:$0xff] }
  0xcd   : > { %1070 = vst [vmem:[%s1600_s26 + $0x390] sm:$0xff] %v782_v62  ;;  %v788_v40 = vadd.f32 %v3170_v47, %v392_v56  ;;  %v3172_v62 = vld [vmem:[#allocation32_spill] sm:$0xff]  ;;  %v791_v56 = vadd.f32 %v3144_v60, %v395_v57  ;;  %v3177_v47 = vld [vmem:[#allocation38_spill] sm:$0xff] }
  0xce   : > { %1071 = vst [vmem:[%s1600_s26 + $0x398] sm:$0xff] %v783_v63  ;;  %v789_v9 = vadd.f32 %v3172_v62, %v393_v34  ;;  %v3174_v63 = vld [vmem:[#allocation34_spill] sm:$0xff]  ;;  %v792_v34 = vadd.f32 %v3177_v47, %v396_v5  ;;  %v3178_v62 = vld [vmem:[#allocation45_spill] sm:$0xff] }
  0xcf   : > { %1072 = vst [vmem:[%s1600_s26 + $0x3a0] sm:$0xff] %v784_v2  ;;  %v790_v12 = vadd.f32 %v3174_v63, %v394_v43  ;;  %v398_v2 = vmul.f32 %v3175_v31, %v2130_v1  ;;  %v3180_v43 = vld [vmem:[#allocation40_spill] sm:$0xff]  ;;  %v3182_v57 = vld [vmem:[#allocation42_spill] sm:$0xff] }
  0xd0   : > { %1073 = vst [vmem:[%s1600_s26 + $0x3a8] sm:$0xff] %v785_v48  ;;  %v399_v48 = vmul.f32 %v3176_v36, %v2130_v1  ;;  %v793_v31 = vadd.f32 %v3180_v43, %v397_v11  ;;  %v3185_v43 = vld [vmem:[#allocation53_spill] sm:$0xff] }
  0xd1   : > { %1074 = vst [vmem:[%s1600_s26 + $0x3b0] sm:$0xff] %v786_v27  ;;  %v400_v27 = vmul.f32 %v3178_v62, %v2130_v1  ;;  %v794_v36 = vadd.f32 %v3182_v57, %v398_v2  ;;  %v3187_v2 = vld [vmem:[#allocation48_spill] sm:$0xff] }
  0xd2   : > { %1075 = vst [vmem:[%s1600_s26 + $0x3b8] sm:$0xff] %v787_v6  ;;  %v3181_v6 = vld [vmem:[#allocation47_spill] sm:$0xff]  ;;  %v795_v62 = vadd.f32 %v3121_v0, %v399_v48  ;;  %v3189_v48 = vld [vmem:[#allocation50_spill] sm:$0xff] }
  0xd3   : > { %1076 = vst [vmem:[%s1600_s26 + $0x3c0] sm:$0xff] %v788_v40  ;;  %v401_v63 = vmul.f32 %v3181_v6, %v2130_v1  ;;  %v3183_v40 = vld [vmem:[#allocation49_spill] sm:$0xff]  ;;  %v796_v11 = vadd.f32 %v3153_v35, %v400_v27  ;;  %v3186_v6 = vld [vmem:[#allocation8_spill] sm:$0xff] }
  0xd4   : > { %1077 = vst [vmem:[%s1600_s26 + $0x3c8] sm:$0xff] %v789_v9  ;;  %v402_v5 = vmul.f32 %v3183_v40, %v2130_v1  ;;  %v403_v9 = vmul.f32 %v3184_v52, %v2130_v1  ;;  %v126_v47 = vadd.s32 %v3186_v6, %v116_v30  ;;  %v3191_v30 = vld [vmem:[#allocation59_spill] sm:$0xff] }
  0xd5   : > { %1078 = vst [vmem:[%s1600_s26 + $0x3d0] sm:$0xff] %v790_v12  ;;  %v404_v12 = vmul.f32 %v3185_v43, %v2130_v1  ;;  %v797_v40 = vadd.f32 %v3187_v2, %v401_v63 }
  0xd6   : > { %1079 = vst [vmem:[%s1600_s26 + $0x3d8] sm:$0xff] %v791_v56  ;;  %v3188_v56 = vld [vmem:[#allocation55_spill] sm:$0xff]  ;;  %v798_v52 = vadd.f32 %v3189_v48, %v402_v5  ;;  %v799_v43 = vadd.f32 %v3159_v33, %v403_v9 }
  0xd7   : > { %1080 = vst [vmem:[%s1600_s26 + $0x3e0] sm:$0xff] %v792_v34  ;;  %v405_v57 = vmul.f32 %v3188_v56, %v2130_v1  ;;  %v3190_v34 = vld [vmem:[#allocation57_spill] sm:$0xff]  ;;  %v800_v63 = vadd.f32 %v3161_v61, %v404_v12  ;;  %v134_v56 = vcvt.s32.f32 %v126_v47  ;;  %v411_v47 = vmul.f32 %v3136_v39, %v2130_v1 }
  0xd8   : > { %1081 = vst [vmem:[%s1600_s26 + $0x3e8] sm:$0xff] %v793_v31  ;;  %v406_v27 = vmul.f32 %v3190_v34, %v2130_v1  ;;  %v407_v31 = vmul.f32 %v3191_v30, %v2130_v1 }
  0xd9   : > { %1082 = vst [vmem:[%s1600_s26 + $0x3f0] sm:$0xff] %v794_v36  ;;  %v408_v36 = vmul.f32 %v3162_v26, %v2130_v1  ;;  %v801_v5 = vadd.f32 %v3163_v14, %v405_v57 }
  0xda   : > { %1083 = vst [vmem:[%s1600_s26 + $0x3f8] sm:$0xff] %v795_v62  ;;  %v409_v62 = vmul.f32 %v3164_v37, %v2130_v1  ;;  %v802_v9 = vadd.f32 %v3133_v53, %v406_v27  ;;  %v803_v12 = vadd.f32 %v3135_v18, %v407_v31 }
  0xdb   : > { %1084 = vst [vmem:[%s1600_s26 + $0x400] sm:$0xff] %v796_v11  ;;  %v3192_v11 = vld [vmem:[#allocation65_spill] sm:$0xff]  ;;  %v804_v57 = vadd.f32 %v3137_v23, %v408_v36  ;;  %v807_v36 = vadd.f32 %v1812_v58, %v411_v47 }
  0xdc   : > { %1085 = vst [vmem:[%s1600_s26 + $0x408] sm:$0xff] %v797_v40  ;;  %v410_v30 = vmul.f32 %v3192_v11, %v2130_v1  ;;  %v2278_v40 = vmul.f32 2.0, %v134_v56  ;;  %v805_v27 = vadd.f32 %v3139_v7, %v409_v62  ;;  %v415_v56 = vmul.f32 %v1840_v45, %v2130_v1 }
  0xdd   : > { %1086 = vst [vmem:[%s1600_s26 + $0x410] sm:$0xff] %v798_v52  ;;  %v412_v52 = vmul.f32 %v3138_v59, %v2130_v1 }
  0xde   : > { %1087 = vst [vmem:[%s1600_s26 + $0x418] sm:$0xff] %v799_v43  ;;  %v413_v43 = vmul.f32 %v3166_v29, %v2130_v1  ;;  %v806_v31 = vadd.f32 %v1807_v44, %v410_v30  ;;  %v416_v62 = vmul.f32 %v1565_v15, %v2278_v40  ;;  %v811_v47 = vadd.f32 %v1850_v28, %v415_v56 }
  0xdf   : > { %1088 = vst [vmem:[%s1600_s26 + $0x420] sm:$0xff] %v800_v63  ;;  %v414_v63 = vmul.f32 %v1833_v8, %v2130_v1  ;;  %v418_v1 = vmul.f32 %v1573_v20, %v2278_v40 }
  0xe0   : > { %1089 = vst [vmem:[%s1600_s26 + $0x428] sm:$0xff] %v801_v5  ;;  %v808_v5 = vadd.f32 %v3140_v51, %v412_v52  ;;  %v809_v30 = vadd.f32 %v1829_v46, %v413_v43  ;;  %v812_v52 = vadd.f32 %v1567_v16, %v416_v62 }
  0xe1   : > { %1090 = vst [vmem:[%s1600_s26 + $0x430] sm:$0xff] %v802_v9  ;;  %v417_v9 = vmul.f32 %v1569_v17, %v2278_v40 }
  0xe2   : > { %1091 = vst [vmem:[%s1600_s26 + $0x438] sm:$0xff] %v803_v12  ;;  %v810_v12 = vadd.f32 %v1835_v42, %v414_v63  ;;  %v814_v63 = vadd.f32 %v1575_v21, %v418_v1 }
  0xe3   : > { %1092 = vst [vmem:[%s1600_s26 + $0x440] sm:$0xff] %v804_v57  ;;  %v419_v57 = vmul.f32 %v1577_v22, %v2278_v40  ;;  %v813_v43 = vadd.f32 %v1571_v19, %v417_v9 }
  0xe4   : > { %1093 = vst [vmem:[%s1600_s26 + $0x448] sm:$0xff] %v805_v27  ;;  %v420_v27 = vmul.f32 %v3167_v24, %v2278_v40 }
  0xe5   : > { %1094 = vst [vmem:[%s1600_s26 + $0x450] sm:$0xff] %v806_v31  ;;  %v421_v31 = vmul.f32 %v3141_v32, %v2278_v40  ;;  %v815_v56 = vadd.f32 %v1583_v25, %v419_v57 }
  0xe6   : > { %1095 = vst [vmem:[%s1600_s26 + $0x458] sm:$0xff] %v807_v36  ;;  %v422_v36 = vmul.f32 %v1612_v49, %v2278_v40  ;;  %v816_v62 = vadd.f32 %v1595_v38, %v420_v27  ;;  %v3193_v27 = vld [vmem:[#allocation22_spill] sm:$0xff] }
  0xe7   : > { %1096 = vst [vmem:[%s1600_s26 + $0x460] sm:$0xff] %v808_v5  ;;  %v423_v5 = vmul.f32 %v3142_v3, %v2278_v40  ;;  %v817_v9 = vadd.f32 %v1605_v41, %v421_v31  ;;  %v3194_v31 = vld [vmem:[#allocation29_spill] sm:$0xff] }
  0xe8   : > { %1097 = vst [vmem:[%s1600_s26 + $0x468] sm:$0xff] %v809_v30  ;;  %v424_v30 = vmul.f32 %v1622_v55, %v2278_v40  ;;  %v818_v1 = vadd.f32 %v1614_v50, %v422_v36 }
  0xe9   : > { %1098 = vst [vmem:[%s1600_s26 + $0x470] sm:$0xff] %v810_v12  ;;  %v425_v12 = vmul.f32 %v1635_v4, %v2278_v40  ;;  %v819_v57 = vadd.f32 %v1620_v54, %v423_v5  ;;  %v428_v4 = vmul.f32 %v3194_v31, %v2278_v40  ;;  %v3200_v31 = vld [vmem:[#allocation35_spill] sm:$0xff] }
  0xea   : > { %1099 = vst [vmem:[%s1600_s26 + $0x478] sm:$0xff] %v811_v47  ;;  %v426_v47 = vmul.f32 %v1641_v10, %v2278_v40  ;;  %v3196_v10 = vld [vmem:[#allocation31_spill] sm:$0xff] }
  0xeb   : > { %1100 = vst [vmem:[%s1600_s26 + $0x480] sm:$0xff] %v812_v52  ;;  %v427_v52 = vmul.f32 %v1648_v13, %v2278_v40  ;;  %v429_v50 = vmul.f32 %v3196_v10, %v2278_v40  ;;  %v3198_v13 = vld [vmem:[#allocation33_spill] sm:$0xff] }
  0xec   : > { %1101 = vst [vmem:[%s1600_s26 + $0x488] sm:$0xff] %v813_v43  ;;  %v820_v43 = vadd.f32 %v3193_v27, %v424_v30  ;;  %v430_v54 = vmul.f32 %v3198_v13, %v2278_v40  ;;  %v431_v27 = vmul.f32 %v3200_v31, %v2278_v40  ;;  %v3202_v10 = vld [vmem:[#allocation37_spill] sm:$0xff]  ;;  %v3204_v13 = vld [vmem:[#allocation39_spill] sm:$0xff] }
  0xed   : > { %1102 = vst [vmem:[%s1600_s26 + $0x490] sm:$0xff] %v814_v63  ;;  %v3195_v63 = vld [vmem:[#allocation24_spill] sm:$0xff]  ;;  %v3206_v31 = vld [vmem:[#allocation41_spill] sm:$0xff] }
  0xee   : > { %1103 = vst [vmem:[%s1600_s26 + $0x498] sm:$0xff] %v815_v56  ;;  %v821_v36 = vadd.f32 %v3195_v63, %v425_v12  ;;  %v3197_v56 = vld [vmem:[#allocation26_spill] sm:$0xff]  ;;  %v432_v63 = vmul.f32 %v3202_v10, %v2278_v40  ;;  %v3207_v10 = vld [vmem:[#allocation43_spill] sm:$0xff] }
  0xef   : > { %1104 = vst [vmem:[%s1600_s26 + $0x4a0] sm:$0xff] %v816_v62  ;;  %v822_v5 = vadd.f32 %v3197_v56, %v426_v47  ;;  %v3199_v62 = vld [vmem:[#allocation28_spill] sm:$0xff]  ;;  %v433_v56 = vmul.f32 %v3204_v13, %v2278_v40  ;;  %v3210_v13 = vld [vmem:[#allocation9_spill] sm:$0xff] }
  0xf0   : > { %1105 = vst [vmem:[%s1600_s26 + $0x4a8] sm:$0xff] %v817_v9  ;;  %v823_v30 = vadd.f32 %v3199_v62, %v427_v52  ;;  %v3201_v9 = vld [vmem:[#allocation30_spill] sm:$0xff]  ;;  %v117_v62 = vadd.s32 40, %v3210_v13  ;;  %v3215_v13 = vld [vmem:[#allocation51_spill] sm:$0xff] }
  0xf1   : > { %1106 = vst [vmem:[%s1600_s26 + $0x4b0] sm:$0xff] %v818_v1  ;;  %v824_v12 = vadd.f32 %v3201_v9, %v428_v4  ;;  %v3203_v1 = vld [vmem:[#allocation32_spill] sm:$0xff]  ;;  %v827_v4 = vadd.f32 %v3144_v60, %v431_v27  ;;  %v3208_v9 = vld [vmem:[#allocation38_spill] sm:$0xff] }
  0xf2   : > { %1107 = vst [vmem:[%s1600_s26 + $0x4b8] sm:$0xff] %v819_v57  ;;  %v825_v47 = vadd.f32 %v3203_v1, %v429_v50  ;;  %v3205_v57 = vld [vmem:[#allocation34_spill] sm:$0xff]  ;;  %v828_v50 = vadd.f32 %v3208_v9, %v432_v63  ;;  %v3209_v1 = vld [vmem:[#allocation45_spill] sm:$0xff] }
  0xf3   : > { %1108 = vst [vmem:[%s1600_s26 + $0x4c0] sm:$0xff] %v820_v43  ;;  %v826_v52 = vadd.f32 %v3205_v57, %v430_v54  ;;  %v434_v43 = vmul.f32 %v3206_v31, %v2278_v40  ;;  %v3211_v54 = vld [vmem:[#allocation40_spill] sm:$0xff]  ;;  %v3213_v27 = vld [vmem:[#allocation42_spill] sm:$0xff] }
  0xf4   : > { %1109 = vst [vmem:[%s1600_s26 + $0x4c8] sm:$0xff] %v821_v36  ;;  %v435_v36 = vmul.f32 %v3207_v10, %v2278_v40  ;;  %v829_v31 = vadd.f32 %v3211_v54, %v433_v56  ;;  %v3216_v54 = vld [vmem:[#allocation53_spill] sm:$0xff] }
  0xf5   : > { %1110 = vst [vmem:[%s1600_s26 + $0x4d0] sm:$0xff] %v822_v5  ;;  %v436_v5 = vmul.f32 %v3209_v1, %v2278_v40  ;;  %v830_v10 = vadd.f32 %v3213_v27, %v434_v43 }
  0xf6   : > { %1111 = vst [vmem:[%s1600_s26 + $0x4d8] sm:$0xff] %v823_v30  ;;  %v3212_v30 = vld [vmem:[#allocation47_spill] sm:$0xff]  ;;  %v831_v1 = vadd.f32 %v3121_v0, %v435_v36 }
  0xf7   : > { %1112 = vst [vmem:[%s1600_s26 + $0x4e0] sm:$0xff] %v824_v12  ;;  %v437_v57 = vmul.f32 %v3212_v30, %v2278_v40  ;;  %v3214_v12 = vld [vmem:[#allocation49_spill] sm:$0xff]  ;;  %v832_v56 = vadd.f32 %v3153_v35, %v436_v5  ;;  %v127_v30 = vadd.s32 %v3186_v6, %v117_v62  ;;  %v3218_v62 = vld [vmem:[#allocation59_spill] sm:$0xff] }
  0xf8   : > { %1113 = vst [vmem:[%s1600_s26 + $0x4e8] sm:$0xff] %v825_v47  ;;  %v438_v63 = vmul.f32 %v3214_v12, %v2278_v40  ;;  %v439_v47 = vmul.f32 %v3215_v13, %v2278_v40 }
  0xf9   : > { %1114 = vst [vmem:[%s1600_s26 + $0x4f0] sm:$0xff] %v826_v52  ;;  %v440_v52 = vmul.f32 %v3216_v54, %v2278_v40  ;;  %v833_v43 = vadd.f32 %v3187_v2, %v437_v57 }
  0xfa   : > { %1115 = vst [vmem:[%s1600_s26 + $0x4f8] sm:$0xff] %v827_v4  ;;  %v3217_v4 = vld [vmem:[#allocation55_spill] sm:$0xff]  ;;  %v834_v36 = vadd.f32 %v3189_v48, %v438_v63  ;;  %v835_v5 = vadd.f32 %v3159_v33, %v439_v47 }
  0xfb   : > { %1116 = vst [vmem:[%s1600_s26 + $0x500] sm:$0xff] %v828_v50  ;;  %v441_v12 = vmul.f32 %v3217_v4, %v2278_v40  ;;  %v442_v50 = vmul.f32 %v3190_v34, %v2278_v40  ;;  %v836_v57 = vadd.f32 %v3161_v61, %v440_v52  ;;  %v135_v4 = vcvt.s32.f32 %v127_v30 }
  0xfc   : > { %1117 = vst [vmem:[%s1600_s26 + $0x508] sm:$0xff] %v829_v31  ;;  %v443_v31 = vmul.f32 %v3218_v62, %v2278_v40  ;;  %v447_v30 = vmul.f32 %v3136_v39, %v2278_v40 }
  0xfd   : > { %1118 = vst [vmem:[%s1600_s26 + $0x510] sm:$0xff] %v830_v10  ;;  %v444_v10 = vmul.f32 %v3162_v26, %v2278_v40  ;;  %v837_v63 = vadd.f32 %v3163_v14, %v441_v12  ;;  %v838_v47 = vadd.f32 %v3133_v53, %v442_v50 }
  0xfe   : > { %1119 = vst [vmem:[%s1600_s26 + $0x518] sm:$0xff] %v831_v1  ;;  %v445_v1 = vmul.f32 %v3164_v37, %v2278_v40  ;;  %v839_v52 = vadd.f32 %v3135_v18, %v443_v31 }
  0xff   : > { %1120 = vst [vmem:[%s1600_s26 + $0x520] sm:$0xff] %v832_v56  ;;  %v446_v56 = vmul.f32 %v3192_v11, %v2278_v40  ;;  %v840_v12 = vadd.f32 %v3137_v23, %v444_v10  ;;  %v843_v10 = vadd.f32 %v1812_v58, %v447_v30 }
 0x100   : > { %1121 = vst [vmem:[%s1600_s26 + $0x528] sm:$0xff] %v833_v43  ;;  %v448_v43 = vmul.f32 %v3138_v59, %v2278_v40  ;;  %v841_v50 = vadd.f32 %v3139_v7, %v445_v1 }
 0x101   : > { %1122 = vst [vmem:[%s1600_s26 + $0x530] sm:$0xff] %v834_v36  ;;  %v2426_v36 = vmul.f32 2.0, %v135_v4  ;;  %v842_v31 = vadd.f32 %v1807_v44, %v446_v56  ;;  %v451_v4 = vmul.f32 %v1840_v45, %v2278_v40 }
 0x102   : > { %1123 = vst [vmem:[%s1600_s26 + $0x538] sm:$0xff] %v835_v5  ;;  %v449_v5 = vmul.f32 %v3166_v29, %v2278_v40 }
 0x103   : > { %1124 = vst [vmem:[%s1600_s26 + $0x540] sm:$0xff] %v836_v57  ;;  %v450_v57 = vmul.f32 %v1833_v8, %v2278_v40  ;;  %v452_v1 = vmul.f32 %v1565_v15, %v2426_v36  ;;  %v453_v56 = vmul.f32 %v1569_v17, %v2426_v36  ;;  %v454_v40 = vmul.f32 %v1573_v20, %v2426_v36 }
 0x104   : > { %1125 = vst [vmem:[%s1600_s26 + $0x548] sm:$0xff] %v837_v63  ;;  %v844_v63 = vadd.f32 %v3140_v51, %v448_v43  ;;  %v847_v30 = vadd.f32 %v1850_v28, %v451_v4 }
 0x105   : > { %1126 = vst [vmem:[%s1600_s26 + $0x550] sm:$0xff] %v838_v47  ;;  %v845_v47 = vadd.f32 %v1829_v46, %v449_v5  ;;  %v848_v43 = vadd.f32 %v1567_v16, %v452_v1  ;;  %v849_v5 = vadd.f32 %v1571_v19, %v453_v56 }
 0x106   : > { %1127 = vst [vmem:[%s1600_s26 + $0x558] sm:$0xff] %v839_v52  ;;  %v846_v52 = vadd.f32 %v1835_v42, %v450_v57  ;;  %v850_v57 = vadd.f32 %v1575_v21, %v454_v40 }
 0x107   : > { %1128 = vst [vmem:[%s1600_s26 + $0x560] sm:$0xff] %v840_v12  ;;  %v455_v12 = vmul.f32 %v1577_v22, %v2426_v36 }
 0x108   : > { %1129 = vst [vmem:[%s1600_s26 + $0x568] sm:$0xff] %v841_v50  ;;  %v456_v50 = vmul.f32 %v3167_v24, %v2426_v36 }
 0x109   : > { %1130 = vst [vmem:[%s1600_s26 + $0x570] sm:$0xff] %v842_v31  ;;  %v457_v31 = vmul.f32 %v3141_v32, %v2426_v36  ;;  %v851_v4 = vadd.f32 %v1583_v25, %v455_v12 }
 0x10a   : > { %1131 = vst [vmem:[%s1600_s26 + $0x578] sm:$0xff] %v843_v10  ;;  %v458_v10 = vmul.f32 %v1612_v49, %v2426_v36  ;;  %v852_v1 = vadd.f32 %v1595_v38, %v456_v50 }
 0x10b   : > { %1132 = vst [vmem:[%s1600_s26 + $0x580] sm:$0xff] %v844_v63  ;;  %v459_v63 = vmul.f32 %v3142_v3, %v2426_v36  ;;  %v853_v56 = vadd.f32 %v1605_v41, %v457_v31  ;;  %v3221_v3 = vld [vmem:[#allocation25_spill] sm:$0xff] }
 0x10c   : > { %1133 = vst [vmem:[%s1600_s26 + $0x588] sm:$0xff] %v845_v47  ;;  %v460_v47 = vmul.f32 %v1622_v55, %v2426_v36  ;;  %v462_v25 = vmul.f32 %v3221_v3, %v2426_v36  ;;  %v3223_v55 = vld [vmem:[#allocation27_spill] sm:$0xff] }
 0x10d   : > { %1134 = vst [vmem:[%s1600_s26 + $0x590] sm:$0xff] %v846_v52  ;;  %v3219_v52 = vld [vmem:[#allocation23_spill] sm:$0xff]  ;;  %v463_v38 = vmul.f32 %v3223_v55, %v2426_v36  ;;  %v3229_v55 = vld [vmem:[#allocation33_spill] sm:$0xff] }
 0x10e   : > { %1135 = vst [vmem:[%s1600_s26 + $0x598] sm:$0xff] %v847_v30  ;;  %v461_v40 = vmul.f32 %v3219_v52, %v2426_v36  ;;  %v3220_v30 = vld [vmem:[#allocation18_spill] sm:$0xff]  ;;  %v3225_v52 = vld [vmem:[#allocation29_spill] sm:$0xff]  ;;  %v3227_v3 = vld [vmem:[#allocation31_spill] sm:$0xff] }
 0x10f   : > { %1136 = vst [vmem:[%s1600_s26 + $0x5a0] sm:$0xff] %v848_v43  ;;  %v854_v12 = vadd.f32 %v3220_v30, %v458_v10  ;;  %v3222_v43 = vld [vmem:[#allocation20_spill] sm:$0xff]  ;;  %v464_v41 = vmul.f32 %v3225_v52, %v2426_v36  ;;  %v465_v30 = vmul.f32 %v3227_v3, %v2426_v36  ;;  %v3231_v52 = vld [vmem:[#allocation35_spill] sm:$0xff]  ;;  %v3233_v3 = vld [vmem:[#allocation37_spill] sm:$0xff] }
 0x110   : > { %1137 = vst [vmem:[%s1600_s26 + $0x5a8] sm:$0xff] %v849_v5  ;;  %v855_v50 = vadd.f32 %v3222_v43, %v459_v63  ;;  %v3224_v5 = vld [vmem:[#allocation22_spill] sm:$0xff]  ;;  %v466_v43 = vmul.f32 %v3229_v55, %v2426_v36  ;;  %v3235_v55 = vld [vmem:[#allocation39_spill] sm:$0xff] }
 0x111   : > { %1138 = vst [vmem:[%s1600_s26 + $0x5b0] sm:$0xff] %v850_v57  ;;  %v856_v31 = vadd.f32 %v3224_v5, %v460_v47  ;;  %v3226_v57 = vld [vmem:[#allocation24_spill] sm:$0xff]  ;;  %v467_v5 = vmul.f32 %v3231_v52, %v2426_v36  ;;  %v3237_v52 = vld [vmem:[#allocation41_spill] sm:$0xff] }
 0x112   : > { %1139 = vst [vmem:[%s1600_s26 + $0x5b8] sm:$0xff] %v851_v4  ;;  %v857_v10 = vadd.f32 %v3226_v57, %v461_v40  ;;  %v3228_v4 = vld [vmem:[#allocation26_spill] sm:$0xff]  ;;  %v468_v57 = vmul.f32 %v3233_v3, %v2426_v36  ;;  %v3238_v3 = vld [vmem:[#allocation43_spill] sm:$0xff] }
 0x113   : > { %1140 = vst [vmem:[%s1600_s26 + $0x5c0] sm:$0xff] %v852_v1  ;;  %v858_v63 = vadd.f32 %v3228_v4, %v462_v25  ;;  %v3230_v1 = vld [vmem:[#allocation28_spill] sm:$0xff]  ;;  %v469_v4 = vmul.f32 %v3235_v55, %v2426_v36  ;;  %v3240_v55 = vld [vmem:[#allocation9_spill] sm:$0xff] }
 0x114   : > { %1141 = vst [vmem:[%s1600_s26 + $0x5c8] sm:$0xff] %v853_v56  ;;  %v859_v47 = vadd.f32 %v3230_v1, %v463_v38  ;;  %v3232_v56 = vld [vmem:[#allocation30_spill] sm:$0xff] }
 0x115   : > { %1142 = vst [vmem:[%s1600_s26 + $0x5d0] sm:$0xff] %v854_v12  ;;  %v860_v40 = vadd.f32 %v3232_v56, %v464_v41  ;;  %v3234_v12 = vld [vmem:[#allocation32_spill] sm:$0xff]  ;;  %v863_v41 = vadd.f32 %v3144_v60, %v467_v5  ;;  %v118_v56 = vadd.s32 48, %v3240_v55 }
 0x116   : > { %1143 = vst [vmem:[%s1600_s26 + $0x5d8] sm:$0xff] %v855_v50  ;;  %v861_v25 = vadd.f32 %v3234_v12, %v465_v30  ;;  %v3236_v50 = vld [vmem:[#allocation34_spill] sm:$0xff]  ;;  %v864_v30 = vadd.f32 %v3208_v9, %v468_v57  ;;  %v3239_v12 = vld [vmem:[#allocation45_spill] sm:$0xff] }
 0x117   : > { %1144 = vst [vmem:[%s1600_s26 + $0x5e0] sm:$0xff] %v856_v31  ;;  %v862_v38 = vadd.f32 %v3236_v50, %v466_v43  ;;  %v470_v31 = vmul.f32 %v3237_v52, %v2426_v36  ;;  %v3241_v43 = vld [vmem:[#allocation40_spill] sm:$0xff] }
 0x118   : > { %1145 = vst [vmem:[%s1600_s26 + $0x5e8] sm:$0xff] %v857_v10  ;;  %v471_v10 = vmul.f32 %v3238_v3, %v2426_v36  ;;  %v865_v52 = vadd.f32 %v3241_v43, %v469_v4 }
 0x119   : > { %1146 = vst [vmem:[%s1600_s26 + $0x5f0] sm:$0xff] %v858_v63  ;;  %v472_v63 = vmul.f32 %v3239_v12, %v2426_v36  ;;  %v866_v5 = vadd.f32 %v3213_v27, %v470_v31 }
 0x11a   : > { %1147 = vst [vmem:[%s1600_s26 + $0x5f8] sm:$0xff] %v859_v47  ;;  %v3242_v47 = vld [vmem:[#allocation47_spill] sm:$0xff]  ;;  %v867_v12 = vadd.f32 %v3121_v0, %v471_v10 }
 0x11b   : > { %1148 = vst [vmem:[%s1600_s26 + $0x600] sm:$0xff] %v860_v40  ;;  %v473_v50 = vmul.f32 %v3242_v47, %v2426_v36  ;;  %v3243_v40 = vld [vmem:[#allocation49_spill] sm:$0xff]  ;;  %v868_v4 = vadd.f32 %v3153_v35, %v472_v63  ;;  %v128_v47 = vadd.s32 %v3186_v6, %v118_v56 }
 0x11c   : > { %1149 = vst [vmem:[%s1600_s26 + $0x608] sm:$0xff] %v861_v25  ;;  %v474_v57 = vmul.f32 %v3243_v40, %v2426_v36  ;;  %v475_v25 = vmul.f32 %v3215_v13, %v2426_v36 }
 0x11d   : > { %1150 = vst [vmem:[%s1600_s26 + $0x610] sm:$0xff] %v862_v38  ;;  %v476_v38 = vmul.f32 %v3216_v54, %v2426_v36  ;;  %v869_v31 = vadd.f32 %v3187_v2, %v473_v50  ;;  %v480_v50 = vmul.f32 %v3162_v26, %v2426_v36 }
 0x11e   : > { %1151 = vst [vmem:[%s1600_s26 + $0x618] sm:$0xff] %v863_v41  ;;  %v3244_v41 = vld [vmem:[#allocation55_spill] sm:$0xff]  ;;  %v870_v10 = vadd.f32 %v3189_v48, %v474_v57  ;;  %v871_v63 = vadd.f32 %v3159_v33, %v475_v25 }
 0x11f   : > { %1152 = vst [vmem:[%s1600_s26 + $0x620] sm:$0xff] %v864_v30  ;;  %v477_v40 = vmul.f32 %v3244_v41, %v2426_v36  ;;  %v478_v30 = vmul.f32 %v3190_v34, %v2426_v36  ;;  %v872_v56 = vadd.f32 %v3161_v61, %v476_v38 }
 0x120   : > { %1153 = vst [vmem:[%s1600_s26 + $0x628] sm:$0xff] %v865_v52  ;;  %v479_v52 = vmul.f32 %v3218_v62, %v2426_v36 }
 0x121   : > { %1154 = vst [vmem:[%s1600_s26 + $0x630] sm:$0xff] %v866_v5  ;;  %v136_v5 = vcvt.s32.f32 %v128_v47  ;;  %v873_v57 = vadd.f32 %v3163_v14, %v477_v40  ;;  %v874_v25 = vadd.f32 %v3133_v53, %v478_v30  ;;  %v483_v47 = vmul.f32 %v3136_v39, %v2426_v36 }
 0x122   : > { %1155 = vst [vmem:[%s1600_s26 + $0x638] sm:$0xff] %v867_v12  ;;  %v481_v12 = vmul.f32 %v3164_v37, %v2426_v36  ;;  %v875_v38 = vadd.f32 %v3135_v18, %v479_v52  ;;  %v876_v40 = vadd.f32 %v3137_v23, %v480_v50 }
 0x123   : > { %1156 = vst [vmem:[%s1600_s26 + $0x640] sm:$0xff] %v868_v4  ;;  %v482_v4 = vmul.f32 %v3192_v11, %v2426_v36  ;;  %v879_v50 = vadd.f32 %v1812_v58, %v483_v47 }
 0x124   : > { %1157 = vst [vmem:[%s1600_s26 + $0x648] sm:$0xff] %v869_v31  ;;  %v484_v31 = vmul.f32 %v3138_v59, %v2426_v36  ;;  %v877_v30 = vadd.f32 %v3139_v7, %v481_v12 }
 0x125   : > { %1158 = vst [vmem:[%s1600_s26 + $0x650] sm:$0xff] %v870_v10  ;;  %v2574_v10 = vmul.f32 2.0, %v136_v5  ;;  %v878_v52 = vadd.f32 %v1807_v44, %v482_v4  ;;  %v487_v5 = vmul.f32 %v1840_v45, %v2426_v36 }
 0x126   : > { %1159 = vst [vmem:[%s1600_s26 + $0x658] sm:$0xff] %v871_v63  ;;  %v485_v63 = vmul.f32 %v3166_v29, %v2426_v36 }
 0x127   : > { %1160 = vst [vmem:[%s1600_s26 + $0x660] sm:$0xff] %v872_v56  ;;  %v486_v56 = vmul.f32 %v1833_v8, %v2426_v36  ;;  %v488_v12 = vmul.f32 %v1565_v15, %v2574_v10  ;;  %v489_v4 = vmul.f32 %v1569_v17, %v2574_v10  ;;  %v490_v36 = vmul.f32 %v1573_v20, %v2574_v10 }
 0x128   : > { %1161 = vst [vmem:[%s1600_s26 + $0x668] sm:$0xff] %v873_v57  ;;  %v880_v57 = vadd.f32 %v3140_v51, %v484_v31  ;;  %v883_v47 = vadd.f32 %v1850_v28, %v487_v5  ;;  %v3245_v5 = vld [vmem:[#allocation12_spill] sm:$0xff] }
 0x129   : > { %1162 = vst [vmem:[%s1600_s26 + $0x670] sm:$0xff] %v874_v25  ;;  %v881_v25 = vadd.f32 %v1829_v46, %v485_v63  ;;  %v884_v31 = vadd.f32 %v1567_v16, %v488_v12  ;;  %v885_v63 = vadd.f32 %v1571_v19, %v489_v4  ;;  %v3246_v12 = vld [vmem:[#allocation19_spill] sm:$0xff] }
 0x12a   : > { %1163 = vst [vmem:[%s1600_s26 + $0x678] sm:$0xff] %v875_v38  ;;  %v882_v38 = vadd.f32 %v1835_v42, %v486_v56  ;;  %v886_v56 = vadd.f32 %v1575_v21, %v490_v36 }
 0x12b   : > { %1164 = vst [vmem:[%s1600_s26 + $0x680] sm:$0xff] %v876_v40  ;;  %v491_v40 = vmul.f32 %v1577_v22, %v2574_v10 }
 0x12c   : > { %1165 = vst [vmem:[%s1600_s26 + $0x688] sm:$0xff] %v877_v30  ;;  %v492_v30 = vmul.f32 %v3167_v24, %v2574_v10  ;;  %v495_v24 = vmul.f32 %v3246_v12, %v2574_v10  ;;  %v3252_v12 = vld [vmem:[#allocation25_spill] sm:$0xff] }
 0x12d   : > { %1166 = vst [vmem:[%s1600_s26 + $0x690] sm:$0xff] %v878_v52  ;;  %v493_v52 = vmul.f32 %v3141_v32, %v2574_v10  ;;  %v3248_v32 = vld [vmem:[#allocation21_spill] sm:$0xff] }
 0x12e   : > { %1167 = vst [vmem:[%s1600_s26 + $0x698] sm:$0xff] %v879_v50  ;;  %v494_v50 = vmul.f32 %v1612_v49, %v2574_v10  ;;  %v496_v19 = vmul.f32 %v3248_v32, %v2574_v10  ;;  %v3250_v49 = vld [vmem:[#allocation23_spill] sm:$0xff] }
 0x12f   : > { %1168 = vst [vmem:[%s1600_s26 + $0x6a0] sm:$0xff] %v880_v57  ;;  %v887_v57 = vadd.f32 %v3245_v5, %v491_v40  ;;  %v497_v21 = vmul.f32 %v3250_v49, %v2574_v10  ;;  %v498_v5 = vmul.f32 %v3252_v12, %v2574_v10  ;;  %v3254_v32 = vld [vmem:[#allocation27_spill] sm:$0xff]  ;;  %v3256_v49 = vld [vmem:[#allocation29_spill] sm:$0xff] }
 0x130   : > { %1169 = vst [vmem:[%s1600_s26 + $0x6a8] sm:$0xff] %v881_v25  ;;  %v3247_v25 = vld [vmem:[#allocation14_spill] sm:$0xff]  ;;  %v3258_v12 = vld [vmem:[#allocation31_spill] sm:$0xff] }
 0x131   : > { %1170 = vst [vmem:[%s1600_s26 + $0x6b0] sm:$0xff] %v882_v38  ;;  %v888_v4 = vadd.f32 %v3247_v25, %v492_v30  ;;  %v3249_v38 = vld [vmem:[#allocation16_spill] sm:$0xff]  ;;  %v499_v25 = vmul.f32 %v3254_v32, %v2574_v10  ;;  %v3260_v32 = vld [vmem:[#allocation33_spill] sm:$0xff] }
 0x132   : > { %1171 = vst [vmem:[%s1600_s26 + $0x6b8] sm:$0xff] %v883_v47  ;;  %v889_v36 = vadd.f32 %v3249_v38, %v493_v52  ;;  %v3251_v47 = vld [vmem:[#allocation18_spill] sm:$0xff]  ;;  %v500_v38 = vmul.f32 %v3256_v49, %v2574_v10 }
 0x133   : > { %1172 = vst [vmem:[%s1600_s26 + $0x6c0] sm:$0xff] %v884_v31  ;;  %v890_v40 = vadd.f32 %v3251_v47, %v494_v50  ;;  %v3253_v31 = vld [vmem:[#allocation20_spill] sm:$0xff]  ;;  %v501_v47 = vmul.f32 %v3258_v12, %v2574_v10  ;;  %v3263_v12 = vld [vmem:[#allocation37_spill] sm:$0xff] }
 0x134   : > { %1173 = vst [vmem:[%s1600_s26 + $0x6c8] sm:$0xff] %v885_v63  ;;  %v891_v30 = vadd.f32 %v3253_v31, %v495_v24  ;;  %v3255_v63 = vld [vmem:[#allocation22_spill] sm:$0xff]  ;;  %v502_v31 = vmul.f32 %v3260_v32, %v2574_v10  ;;  %v3265_v32 = vld [vmem:[#allocation39_spill] sm:$0xff] }
 0x135   : > { %1174 = vst [vmem:[%s1600_s26 + $0x6d0] sm:$0xff] %v886_v56  ;;  %v892_v52 = vadd.f32 %v3255_v63, %v496_v19  ;;  %v3257_v56 = vld [vmem:[#allocation24_spill] sm:$0xff]  ;;  %v3259_v24 = vld [vmem:[#allocation26_spill] sm:$0xff]  ;;  %v895_v19 = vadd.f32 %v3230_v1, %v499_v25 }
 0x136   : > { %1175 = vst [vmem:[%s1600_s26 + $0x6d8] sm:$0xff] %v887_v57  ;;  %v893_v50 = vadd.f32 %v3257_v56, %v497_v21  ;;  %v894_v57 = vadd.f32 %v3259_v24, %v498_v5  ;;  %v504_v56 = vmul.f32 %v3263_v12, %v2574_v10  ;;  %v505_v24 = vmul.f32 %v3265_v32, %v2574_v10 }
 0x137   : > { %1176 = vst [vmem:[%s1600_s26 + $0x6e0] sm:$0xff] %v888_v4  ;;  %v3261_v4 = vld [vmem:[#allocation35_spill] sm:$0xff]  ;;  %v119_v32 = vadd.s32 56, %v3240_v55  ;;  %v511_v55 = vmul.f32 %v3215_v13, %v2574_v10 }
 0x138   : > { %1177 = vst [vmem:[%s1600_s26 + $0x6e8] sm:$0xff] %v889_v36  ;;  %v503_v49 = vmul.f32 %v3261_v4, %v2574_v10  ;;  %v3262_v36 = vld [vmem:[#allocation30_spill] sm:$0xff]  ;;  %v3267_v4 = vld [vmem:[#allocation41_spill] sm:$0xff] }
 0x139   : > { %1178 = vst [vmem:[%s1600_s26 + $0x6f0] sm:$0xff] %v890_v40  ;;  %v896_v21 = vadd.f32 %v3262_v36, %v500_v38  ;;  %v3264_v40 = vld [vmem:[#allocation32_spill] sm:$0xff] }
 0x13a   : > { %1179 = vst [vmem:[%s1600_s26 + $0x6f8] sm:$0xff] %v891_v30  ;;  %v897_v5 = vadd.f32 %v3264_v40, %v501_v47  ;;  %v3266_v30 = vld [vmem:[#allocation34_spill] sm:$0xff]  ;;  %v899_v38 = vadd.f32 %v3144_v60, %v503_v49  ;;  %v900_v47 = vadd.f32 %v3208_v9, %v504_v56  ;;  %v3268_v40 = vld [vmem:[#allocation45_spill] sm:$0xff] }
 0x13b   : > { %1180 = vst [vmem:[%s1600_s26 + $0x700] sm:$0xff] %v892_v52  ;;  %v898_v25 = vadd.f32 %v3266_v30, %v502_v31  ;;  %v506_v52 = vmul.f32 %v3267_v4, %v2574_v10  ;;  %v901_v31 = vadd.f32 %v3241_v43, %v505_v24 }
 0x13c   : > { %1181 = vst [vmem:[%s1600_s26 + $0x708] sm:$0xff] %v893_v50  ;;  %v507_v50 = vmul.f32 %v3238_v3, %v2574_v10 }
 0x13d   : > { %1182 = vst [vmem:[%s1600_s26 + $0x710] sm:$0xff] %v894_v57  ;;  %v508_v57 = vmul.f32 %v3268_v40, %v2574_v10  ;;  %v902_v49 = vadd.f32 %v3213_v27, %v506_v52 }
 0x13e   : > { %1183 = vst [vmem:[%s1600_s26 + $0x718] sm:$0xff] %v895_v19  ;;  %v3269_v19 = vld [vmem:[#allocation47_spill] sm:$0xff]  ;;  %v903_v40 = vadd.f32 %v3121_v0, %v507_v50 }
 0x13f   : > { %1184 = vst [vmem:[%s1600_s26 + $0x720] sm:$0xff] %v896_v21  ;;  %v509_v4 = vmul.f32 %v3269_v19, %v2574_v10  ;;  %v3270_v21 = vld [vmem:[#allocation49_spill] sm:$0xff]  ;;  %v904_v24 = vadd.f32 %v3153_v35, %v508_v57  ;;  %v907_v57 = vadd.f32 %v3159_v33, %v511_v55  ;;  %v518_v55 = vmul.f32 %v3192_v11, %v2574_v10 }
 0x140   : > { %1185 = vst [vmem:[%s1600_s26 + $0x728] sm:$0xff] %v897_v5  ;;  %v510_v56 = vmul.f32 %v3270_v21, %v2574_v10  ;;  %v512_v5 = vmul.f32 %v3216_v54, %v2574_v10 }
 0x141   : > { %1186 = vst [vmem:[%s1600_s26 + $0x730] sm:$0xff] %v898_v25  ;;  %v129_v25 = vadd.s32 %v3186_v6, %v119_v32  ;;  %v905_v52 = vadd.f32 %v3187_v2, %v509_v4  ;;  %v515_v32 = vmul.f32 %v3218_v62, %v2574_v10  ;;  %v516_v4 = vmul.f32 %v3162_v26, %v2574_v10 }
 0x142   : > { %1187 = vst [vmem:[%s1600_s26 + $0x738] sm:$0xff] %v899_v38  ;;  %v513_v38 = vmul.f32 %v3244_v41, %v2574_v10  ;;  %v906_v50 = vadd.f32 %v3189_v48, %v510_v56  ;;  %v908_v6 = vadd.f32 %v3161_v61, %v512_v5  ;;  %v519_v5 = vmul.f32 %v3136_v39, %v2574_v10 }
 0x143   : > { %1188 = vst [vmem:[%s1600_s26 + $0x740] sm:$0xff] %v900_v47  ;;  %v514_v47 = vmul.f32 %v3190_v34, %v2574_v10 }
 0x144   : > { %1189 = vst [vmem:[%s1600_s26 + $0x748] sm:$0xff] %v901_v31  ;;  %v137_v31 = vcvt.s32.f32 %v129_v25  ;;  %v912_v25 = vadd.f32 %v3137_v23, %v516_v4  ;;  %v523_v4 = vmul.f32 %v1840_v45, %v2574_v10 }
 0x145   : > { %1190 = vst [vmem:[%s1600_s26 + $0x750] sm:$0xff] %v902_v49  ;;  %v909_v49 = vadd.f32 %v3163_v14, %v513_v38  ;;  %v910_v56 = vadd.f32 %v3133_v53, %v514_v47  ;;  %v521_v47 = vmul.f32 %v3166_v29, %v2574_v10 }
 0x146   : > { %1191 = vst [vmem:[%s1600_s26 + $0x758] sm:$0xff] %v903_v40  ;;  %v517_v40 = vmul.f32 %v3164_v37, %v2574_v10  ;;  %v2722_v38 = vmul.f32 2.0, %v137_v31 }
 0x147   : > { %1192 = vst [vmem:[%s1600_s26 + $0x760] sm:$0xff] %v904_v24  ;;  %v911_v24 = vadd.f32 %v3135_v18, %v515_v32  ;;  %v522_v32 = vmul.f32 %v1833_v8, %v2574_v10 }
 0x148   : > { %1193 = vst [vmem:[%s1600_s26 + $0x768] sm:$0xff] %v905_v52  ;;  %v520_v52 = vmul.f32 %v3138_v59, %v2574_v10  ;;  %v526_v10 = vmul.f32 %v1573_v20, %v2722_v38  ;;  %v3273_v20 = vld [vmem:[#allocation15_spill] sm:$0xff] }
 0x149   : > { %1194 = vst [vmem:[%s1600_s26 + $0x770] sm:$0xff] %v906_v50  ;;  %v913_v50 = vadd.f32 %v3139_v7, %v517_v40  ;;  %v917_v40 = vadd.f32 %v1829_v46, %v521_v47  ;;  %v529_v47 = vmul.f32 %v3273_v20, %v2722_v38  ;;  %v3281_v20 = vld [vmem:[#allocation23_spill] sm:$0xff] }
 0x14a   : > { %1195 = vst [vmem:[%s1600_s26 + $0x778] sm:$0xff] %v907_v57  ;;  %v914_v57 = vadd.f32 %v1807_v44, %v518_v55  ;;  %v916_v31 = vadd.f32 %v3140_v51, %v520_v52  ;;  %v918_v55 = vadd.f32 %v1835_v42, %v522_v32  ;;  %v3272_v52 = vld [vmem:[#allocation10_spill] sm:$0xff] }
 0x14b   : > { %1196 = vst [vmem:[%s1600_s26 + $0x780] sm:$0xff] %v908_v6  ;;  %v915_v6 = vadd.f32 %v1812_v58, %v519_v5 }
 0x14c   : > { %1197 = vst [vmem:[%s1600_s26 + $0x788] sm:$0xff] %v909_v49  ;;  %v524_v49 = vmul.f32 %v1565_v15, %v2722_v38  ;;  %v527_v15 = vmul.f32 %v1577_v22, %v2722_v38  ;;  %v3275_v22 = vld [vmem:[#allocation17_spill] sm:$0xff] }
 0x14d   : > { %1198 = vst [vmem:[%s1600_s26 + $0x790] sm:$0xff] %v910_v56  ;;  %v525_v56 = vmul.f32 %v1569_v17, %v2722_v38  ;;  %v3271_v17 = vld [vmem:[#allocation13_spill] sm:$0xff] }
 0x14e   : > { %1199 = vst [vmem:[%s1600_s26 + $0x798] sm:$0xff] %v911_v24  ;;  %v919_v24 = vadd.f32 %v1850_v28, %v523_v4  ;;  %v920_v5 = vadd.f32 %v1567_v16, %v524_v49  ;;  %v3276_v16 = vld [vmem:[#allocation12_spill] sm:$0xff] }
 0x14f   : > { %1200 = vst [vmem:[%s1600_s26 + $0x7a0] sm:$0xff] %v912_v25  ;;  %v528_v25 = vmul.f32 %v3271_v17, %v2722_v38  ;;  %v923_v4 = vadd.f32 %v3276_v16, %v527_v15  ;;  %v3279_v17 = vld [vmem:[#allocation21_spill] sm:$0xff] }
 0x150   : > { %1201 = vst [vmem:[%s1600_s26 + $0x7a8] sm:$0xff] %v913_v50  ;;  %v921_v50 = vadd.f32 %v3272_v52, %v525_v56  ;;  %v532_v52 = vmul.f32 %v3279_v17, %v2722_v38 }
 0x151   : > { %1202 = vst [vmem:[%s1600_s26 + $0x7b0] sm:$0xff] %v914_v57  ;;  %v3274_v57 = vld [vmem:[#allocation11_spill] sm:$0xff] }
 0x152   : > { %1203 = vst [vmem:[%s1600_s26 + $0x7b8] sm:$0xff] %v915_v6  ;;  %v922_v32 = vadd.f32 %v3274_v57, %v526_v10  ;;  %v530_v6 = vmul.f32 %v3275_v22, %v2722_v38  ;;  %v533_v57 = vmul.f32 %v3281_v20, %v2722_v38  ;;  %v3283_v22 = vld [vmem:[#allocation25_spill] sm:$0xff] }
 0x153   : > { %1204 = vst [vmem:[%s1600_s26 + $0x7c0] sm:$0xff] %v916_v31  ;;  %v3277_v31 = vld [vmem:[#allocation19_spill] sm:$0xff]  ;;  %v534_v16 = vmul.f32 %v3283_v22, %v2722_v38 }
 0x154   : > { %1205 = vst [vmem:[%s1600_s26 + $0x7c8] sm:$0xff] %v917_v40  ;;  %v531_v49 = vmul.f32 %v3277_v31, %v2722_v38  ;;  %v3278_v40 = vld [vmem:[#allocation14_spill] sm:$0xff]  ;;  %v3285_v31 = vld [vmem:[#allocation27_spill] sm:$0xff] }
 0x155   : > { %1206 = vst [vmem:[%s1600_s26 + $0x7d0] sm:$0xff] %v918_v55  ;;  %v924_v56 = vadd.f32 %v3278_v40, %v528_v25  ;;  %v3280_v55 = vld [vmem:[#allocation16_spill] sm:$0xff]  ;;  %v535_v40 = vmul.f32 %v3285_v31, %v2722_v38 }
 0x156   : > { %1207 = vst [vmem:[%s1600_s26 + $0x7d8] sm:$0xff] %v919_v24  ;;  %v925_v10 = vadd.f32 %v3280_v55, %v529_v47  ;;  %v3282_v24 = vld [vmem:[#allocation18_spill] sm:$0xff]  ;;  %v3286_v47 = vld [vmem:[#allocation29_spill] sm:$0xff]  ;;  %v3288_v55 = vld [vmem:[#allocation31_spill] sm:$0xff] }
 0x157   : > { %1208 = vst [vmem:[%s1600_s26 + $0x7e0] sm:$0xff] %v920_v5  ;;  %v926_v15 = vadd.f32 %v3282_v24, %v530_v6  ;;  %v3284_v5 = vld [vmem:[#allocation20_spill] sm:$0xff]  ;;  %v536_v17 = vmul.f32 %v3286_v47, %v2722_v38  ;;  %v537_v20 = vmul.f32 %v3288_v55, %v2722_v38  ;;  %v3290_v24 = vld [vmem:[#allocation33_spill] sm:$0xff] }
 0x158   : > { %1209 = vst [vmem:[%s1600_s26 + $0x7e8] sm:$0xff] %v921_v50  ;;  %v927_v25 = vadd.f32 %v3284_v5, %v531_v49  ;;  %v928_v50 = vadd.f32 %v3255_v63, %v532_v52  ;;  %v538_v22 = vmul.f32 %v3290_v24, %v2722_v38  ;;  %v931_v63 = vadd.f32 %v3230_v1, %v535_v40  ;;  %v3293_v5 = vld [vmem:[#allocation39_spill] sm:$0xff]  ;;  %v3295_v47 = vld [vmem:[#allocation45_spill] sm:$0xff] }
 0x159   : > { %1210 = vst [vmem:[%s1600_s26 + $0x7f0] sm:$0xff] %v922_v32  ;;  %v3287_v32 = vld [vmem:[#allocation24_spill] sm:$0xff]  ;;  %v541_v31 = vmul.f32 %v3293_v5, %v2722_v38 }
 0x15a   : > { %1211 = vst [vmem:[%s1600_s26 + $0x7f8] sm:$0xff] %v923_v4  ;;  %v929_v6 = vadd.f32 %v3287_v32, %v533_v57  ;;  %v3289_v4 = vld [vmem:[#allocation26_spill] sm:$0xff]  ;;  %v540_v57 = vmul.f32 %v3263_v12, %v2722_v38  ;;  %v934_v1 = vadd.f32 %v3266_v30, %v538_v22  ;;  %v543_v12 = vmul.f32 %v3238_v3, %v2722_v38 }
 0x15b   : > { %1212 = vst [vmem:[%s1600_s26 + $0x800] sm:$0xff] %v924_v56  ;;  %v930_v49 = vadd.f32 %v3289_v4, %v534_v16  ;;  %v3291_v56 = vld [vmem:[#allocation35_spill] sm:$0xff]  ;;  %v937_v30 = vadd.f32 %v3241_v43, %v541_v31  ;;  %v545_v32 = vmul.f32 %v3269_v19, %v2722_v38  ;;  %v546_v3 = vmul.f32 %v3270_v21, %v2722_v38 }
 0x15c   : > { %1213 = vst [vmem:[%s1600_s26 + $0x808] sm:$0xff] %v925_v10  ;;  %v539_v52 = vmul.f32 %v3291_v56, %v2722_v38  ;;  %v932_v10 = vadd.f32 %v3262_v36, %v536_v17  ;;  %v544_v17 = vmul.f32 %v3295_v47, %v2722_v38  ;;  %v548_v19 = vmul.f32 %v3216_v54, %v2722_v38 }
 0x15d   : > { %1214 = vst [vmem:[%s1600_s26 + $0x810] sm:$0xff] %v926_v15  ;;  %v3292_v15 = vld [vmem:[#allocation32_spill] sm:$0xff]  ;;  %v549_v21 = vmul.f32 %v3244_v41, %v2722_v38  ;;  %v551_v54 = vmul.f32 %v3218_v62, %v2722_v38  ;;  %v552_v41 = vmul.f32 %v3162_v26, %v2722_v38  ;;  %v554_v62 = vmul.f32 %v3192_v11, %v2722_v38 }
 0x15e   : > { %1215 = vst [vmem:[%s1600_s26 + $0x818] sm:$0xff] %v927_v25  ;;  %v933_v16 = vadd.f32 %v3292_v15, %v537_v20  ;;  %v3294_v25 = vld [vmem:[#allocation41_spill] sm:$0xff]  ;;  %v935_v36 = vadd.f32 %v3144_v60, %v539_v52  ;;  %v940_v43 = vadd.f32 %v3153_v35, %v544_v17  ;;  %v555_v26 = vmul.f32 %v3136_v39, %v2722_v38 }
 0x15f   : > { %1216 = vst [vmem:[%s1600_s26 + $0x820] sm:$0xff] %v928_v50  ;;  %v542_v40 = vmul.f32 %v3294_v25, %v2722_v38  ;;  %v936_v50 = vadd.f32 %v3208_v9, %v540_v57  ;;  %v939_v9 = vadd.f32 %v3121_v0, %v543_v12  ;;  %v942_v0 = vadd.f32 %v3189_v48, %v546_v3 }
 0x160   : > { %1217 = vst [vmem:[%s1600_s26 + $0x828] sm:$0xff] %v929_v6  ;;  %v547_v6 = vmul.f32 %v3215_v13, %v2722_v38  ;;  %v550_v13 = vmul.f32 %v3190_v34, %v2722_v38  ;;  %v945_v48 = vadd.f32 %v3163_v14, %v549_v21  ;;  %v553_v34 = vmul.f32 %v3164_v37, %v2722_v38 }
 0x161   : > { %1218 = vst [vmem:[%s1600_s26 + $0x830] sm:$0xff] %v930_v49  ;;  %v938_v60 = vadd.f32 %v3213_v27, %v542_v40  ;;  %v941_v27 = vadd.f32 %v3187_v2, %v545_v32  ;;  %v944_v2 = vadd.f32 %v3161_v61, %v548_v19  ;;  %v947_v61 = vadd.f32 %v3135_v18, %v551_v54 }
 0x162   : > { %1219 = vst [vmem:[%s1600_s26 + $0x838] sm:$0xff] %v931_v63  ;;  %v943_v35 = vadd.f32 %v3159_v33, %v547_v6  ;;  %v946_v33 = vadd.f32 %v3133_v53, %v550_v13  ;;  %v948_v14 = vadd.f32 %v3137_v23, %v552_v41  ;;  %v556_v53 = vmul.f32 %v3138_v59, %v2722_v38 }
 0x163   : > { %1220 = vst [vmem:[%s1600_s26 + $0x840] sm:$0xff] %v932_v10  ;;  %v949_v37 = vadd.f32 %v3139_v7, %v553_v34  ;;  %v557_v11 = vmul.f32 %v3166_v29, %v2722_v38  ;;  %v950_v18 = vadd.f32 %v1807_v44, %v554_v62  ;;  %v558_v39 = vmul.f32 %v1833_v8, %v2722_v38 }
 0x164   : > { %1221 = vst [vmem:[%s1600_s26 + $0x848] sm:$0xff] %v933_v16  ;;  %v951_v59 = vadd.f32 %v1812_v58, %v555_v26  ;;  %v559_v23 = vmul.f32 %v1840_v45, %v2722_v38  ;;  %v952_v44 = vadd.f32 %v3140_v51, %v556_v53 }
 0x165   : > { %1222 = vst [vmem:[%s1600_s26 + $0x850] sm:$0xff] %v934_v1  ;;  %v953_v8 = vadd.f32 %v1829_v46, %v557_v11  ;;  %v954_v7 = vadd.f32 %v1835_v42, %v558_v39 }
 0x166   : > { %1223 = vst [vmem:[%s1600_s26 + $0x858] sm:$0xff] %v935_v36  ;;  %v955_v58 = vadd.f32 %v1850_v28, %v559_v23 }
 0x167   : > { %1224 = vst [vmem:[%s1600_s26 + $0x860] sm:$0xff] %v936_v50 }
 0x168   : > { %1225 = vst [vmem:[%s1600_s26 + $0x868] sm:$0xff] %v937_v30 }
 0x169   : > { %1226 = vst [vmem:[%s1600_s26 + $0x870] sm:$0xff] %v938_v60 }
 0x16a   : > { %1227 = vst [vmem:[%s1600_s26 + $0x878] sm:$0xff] %v939_v9 }
 0x16b   : > { %1228 = vst [vmem:[%s1600_s26 + $0x880] sm:$0xff] %v940_v43 }
 0x16c   : > { %1229 = vst [vmem:[%s1600_s26 + $0x888] sm:$0xff] %v941_v27 }
 0x16d   : > { %1230 = vst [vmem:[%s1600_s26 + $0x890] sm:$0xff] %v942_v0 }
 0x16e   : > { %1231 = vst [vmem:[%s1600_s26 + $0x898] sm:$0xff] %v943_v35 }
 0x16f   : > { %1232 = vst [vmem:[%s1600_s26 + $0x8a0] sm:$0xff] %v944_v2 }
 0x170   : > { %1233 = vst [vmem:[%s1600_s26 + $0x8a8] sm:$0xff] %v945_v48 }
 0x171   : > { %1234 = vst [vmem:[%s1600_s26 + $0x8b0] sm:$0xff] %v946_v33 }
 0x172   : > { %1235 = vst [vmem:[%s1600_s26 + $0x8b8] sm:$0xff] %v947_v61 }
 0x173   : > { %1236 = vst [vmem:[%s1600_s26 + $0x8c0] sm:$0xff] %v948_v14 }
 0x174   : > { %1237 = vst [vmem:[%s1600_s26 + $0x8c8] sm:$0xff] %v949_v37 }
 0x175   : > { %1238 = vst [vmem:[%s1600_s26 + $0x8d0] sm:$0xff] %v950_v18 }
 0x176   : > { %1239 = vst [vmem:[%s1600_s26 + $0x8d8] sm:$0xff] %v951_v59 }
 0x177   : > { %1240 = vst [vmem:[%s1600_s26 + $0x8e0] sm:$0xff] %v952_v44 }
 0x178   : > { %1241 = vst [vmem:[%s1600_s26 + $0x8e8] sm:$0xff] %v953_v8 }
 0x179   : > { %1242 = vst [vmem:[%s1600_s26 + $0x8f0] sm:$0xff] %v954_v7 }
 0x17a   : > { %1243 = vst [vmem:[%s1600_s26 + $0x8f8] sm:$0xff] %v955_v58 }
 0x17b   : > { %1445 = shalt.err (!%p1442_p7)
}
 0x17c   : > { %s1487_s20 = smov 4608   ;;  %s1488_s21 = smov 288  }
 0x17d   : > { %1340 = dma.vmem_to_hbm [thread:$0]  (%p1537_p5), %s1259_s2, 36864, %s1261_s3, %s1245_s4, %s1487_s20, %s1487_s20, %s1488_s21  }
 0x17e PF: > { %p1352_p8 = scmp.ge.s32.totalorder %s1484_s9, 2  ;;  %s1275_s22 = sand.u32 1, %s1472_s6  }
 0x17f   : > { %s1276_s23 = scalar_lea.sflag [#allocation4], %s1275_s22 }
 0x180   : > { %p1347_p9 = pnand %p1352_p8, %p1541_p6 }
 0x182   : > { %p1348_p10 = pneg %p1347_p9 }
 0x184   : > { %1467 = dma.done.wait (%p1348_p10), %s1276_s23, 36864  }
 0x185   : > { %1469 = vsyncadd (%p1348_p10), %s1276_s23, 4294930432  ;;  %p12_p11 = scmp.ge.s32.totalorder %s1524_s12, 4   ;;  %s3296_s6 = smov %s1476_s7 }
 0x186   : > { %s3297_s7 = smov %s1480_s8  ;;  %s3298_s8 = smov %s1535_s15 }
 0x187   : > { %s3299_s9 = smov %s1524_s12  ;;  %14 = sbr.rel (!%p12_p11) target bundleno = 4 (0x4), region = 61 }
 0x18c   :  { %1282 = vsyncpa [#allocation3], 1 }
 0x18d   :  { %1284 = vsyncpa [#allocation3 + $0x1], 1 }
 0x18e   :  { %1285 = vsyncpa [#allocation4], 1 }
 0x18f   :  { %1287 = vsyncpa [#allocation4 + $0x1], 1 }

</bundles_post_ra>
